<compile_context>
chip_gen: v7x
topology: tpu7x:2x2x1
jax: 0.10.0
libtpu: 0.0.40
codegen_flags: <defaults>
</compile_context>

<pallas_src>
import math
import functools

import jax
import jax.numpy as jnp
from jax import lax
from jax.experimental import pallas as pl
from jax.experimental.pallas import tpu as pltpu


OUT_PAD = 128  # lane-dense width for the padded output-projection slab


# ----------------------------- Pallas kernel ------------------------------

def _layernorm(x, g, b, eps):
    # f32 statistics (v5e has no bf16 VPU/EUP; keep the epilogue in f32).
    mean = jnp.mean(x, axis=-1, keepdims=True)
    xc = x - mean
    var = jnp.mean(xc * xc, axis=-1, keepdims=True)
    return xc * lax.rsqrt(var + eps) * g + b


def _encoder_stack_kernel(
    x0_ref,
    wq_ref, wk_ref, wv_ref, bq_ref, bk_ref, bv_ref,
    wo_ref, bo_ref, ln1_g_ref, ln1_b_ref,
    w_ff1_ref, b_ff1_ref, w_ff2_ref, b_ff2_ref, ln2_g_ref, ln2_b_ref,
    out_w_ref, out_b_ref,
    out_ref,
    x_vmem,
    *, nhead, eps):
    layer = pl.program_id(1)
    n_layers = pl.num_programs(1)
    S, d = x_vmem.shape
    dh = wq_ref.shape[-1]
    scale = 1.0 / math.sqrt(dh)

    # ---- load the (input_proj + PE) tokens into the resident buffer: layer 0 ----
    @pl.when(layer == 0)
    def _():
        x_vmem[...] = x0_ref[...]

    x = x_vmem[...]                                   # (S, d) f32, resident in VMEM
    x_bf = x.astype(jnp.bfloat16)

    # ---- multi-head self-attention -------------------------------------------
    # fori_loop over heads: bounds liveness to ONE head's (S,S) buffers, and the
    # per-head out-projection is accumulated into the (S, d) carry
    # (sum_h head_h @ Wo_h == concat(heads) @ Wo).
    def head_body(h, acc):
        # head-major weight slabs: dynamic index along the leading (untiled) axis,
        # no sub-128-lane column slicing.
        q = (jnp.dot(x_bf, wq_ref[h], preferred_element_type=jnp.float32)
             + bq_ref[h]) * scale                      # fold 1/sqrt(dh) into q
        k = jnp.dot(x_bf, wk_ref[h], preferred_element_type=jnp.float32) + bk_ref[h]
        v = jnp.dot(x_bf, wv_ref[h], preferred_element_type=jnp.float32) + bv_ref[h]

        # contract directly on the head dim (no explicit transpose)
        s = lax.dot_general(q.astype(jnp.bfloat16), k.astype(jnp.bfloat16),
                            (((1,), (1,)), ((), ())),
                            preferred_element_type=jnp.float32)       # (S, S) f32
        m = jnp.max(s, axis=-1, keepdims=True)
        p = jnp.exp(s - m)                                            # unnormalized
        denom = jnp.sum(p, axis=-1, keepdims=True)                    # (S, 1)
        pv = jnp.dot(p.astype(jnp.bfloat16), v.astype(jnp.bfloat16),
                     preferred_element_type=jnp.float32)              # (S, dh)
        # deferred softmax normalization: S*dh multiplies, EUP reciprocal
        head = pv * pl.reciprocal(denom, approx=True)
        return acc + jnp.dot(head.astype(jnp.bfloat16), wo_ref[h],
                             preferred_element_type=jnp.float32)      # (S, d)

    attn = lax.fori_loop(0, nhead, head_body, jnp.zeros((S, d), jnp.float32))
    attn = attn + bo_ref[...]

    # ---- Add & LayerNorm 1 (post-norm) ----
    x1 = _layernorm(x + attn, ln1_g_ref[...], ln1_b_ref[...], eps)

    # ---- feed-forward (ReLU) ----
    hdn = jnp.dot(x1.astype(jnp.bfloat16), w_ff1_ref[...],
                  preferred_element_type=jnp.float32) + b_ff1_ref[...]
    hdn = jnp.maximum(hdn, 0.0)
    ff = jnp.dot(hdn.astype(jnp.bfloat16), w_ff2_ref[...],
                 preferred_element_type=jnp.float32) + b_ff2_ref[...]

    # ---- Add & LayerNorm 2 ----
    x2 = _layernorm(x1 + ff, ln2_g_ref[...], ln2_b_ref[...], eps)

    # store back only if another layer still needs it (dead on the last layer)
    @pl.when(layer < n_layers - 1)
    def _():
        x_vmem[...] = x2

    # ---- output_proj (d -> 2, padded to 128 lanes) fused into the last layer ----
    @pl.when(layer == n_layers - 1)
    def _():
        y = jnp.dot(x2.astype(jnp.bfloat16), out_w_ref[...],
                    preferred_element_type=jnp.float32) + out_b_ref[...]
        out_ref[...] = y.astype(out_ref.dtype)


def _rup(n, m):
    return ((n + m - 1) // m) * m


def _vmem_limit_bytes(S, d, dff, nhead):
    """Explicit scoped-VMEM budget: resident activation + double-buffered
    per-layer weights + one head's (S,S) working set, with headroom."""
    def pad(r, c, itemsize):
        return _rup(r, 8) * _rup(c, 128) * itemsize
    dh = d // nhead
    per_layer_weights = (3 * nhead * pad(d, dh, 2)      # wq/wk/wv (bf16)
                         + 3 * nhead * pad(1, dh, 4)    # bq/bk/bv
                         + nhead * pad(dh, d, 2)        # wo
                         + 5 * pad(1, d, 4)             # bo, ln1/ln2 gamma/beta
                         + pad(d, dff, 2) + pad(1, dff, 4) + pad(dff, d, 2))
    fixed = (pad(S, d, 4) * 2                           # x0 (double-buffered)
             + pad(d, OUT_PAD, 2) + pad(1, OUT_PAD, 4)  # out_w / out_b
             + pad(S, OUT_PAD, 4) * 2)                  # output slab
    scratch = pad(S, d, 4)                              # resident activation
    working = (2 * pad(S, S, 4)                         # one head: scores + probs
               + 3 * pad(S, dh, 4)                      # q, k, v
               + pad(S, dff, 4)                         # ffn hidden
               + 6 * pad(S, d, 4))                      # residuals / temporaries
    total = 2 * per_layer_weights + fixed + scratch + working
    budget = int(total * 1.5) + (2 << 20)
    return max(16 << 20, min(budget, 48 << 20))


def fused_encoder_stack(x0, params, cfg):
    """x0: (B, S, d) tokens (input_proj + PE already applied) ->
       (B, S, OUT_PAD) padded output (first 2 columns valid)."""
    B, S, d = x0.shape
    dff = cfg["d_ff"]
    L = cfg["num_layers"]
    nh = cfg["nhead"]
    dh = d // nh

    def fixed(shape):                       # same block every step (stays resident)
        zeros = (0,) * len(shape)
        return pl.BlockSpec(shape, lambda b, l: zeros)

    def per_layer(*shape):                  # leading layer axis, squeezed in-kernel
        zeros = (0,) * len(shape)
        return pl.BlockSpec((None,) + tuple(shape), lambda b, l: (l,) + zeros)

    def per_batch(*shape):                  # leading batch axis, squeezed in-kernel
        zeros = (0,) * len(shape)
        return pl.BlockSpec((None,) + tuple(shape), lambda b, l: (b,) + zeros)

    in_specs = [
        per_batch(S, d),             # x0 (input_proj + PE, computed in wrapper)
        per_layer(nh, d, dh),        # wq   (head-major)
        per_layer(nh, d, dh),        # wk
        per_layer(nh, d, dh),        # wv
        per_layer(nh, 1, dh),        # bq
        per_layer(nh, 1, dh),        # bk
        per_layer(nh, 1, dh),        # bv
        per_layer(nh, dh, d),        # wo   (per-head out-proj slabs)
        per_layer(1, d),             # bo
        per_layer(1, d),             # ln1_g
        per_layer(1, d),             # ln1_b
        per_layer(d, dff),           # w_ff1
        per_layer(1, dff),           # b_ff1
        per_layer(dff, d),           # w_ff2
        per_layer(1, d),             # b_ff2
        per_layer(1, d),             # ln2_g
        per_layer(1, d),             # ln2_b
        fixed((d, OUT_PAD)),         # out_w (lane-dense padded)
        fixed((1, OUT_PAD)),         # out_b (lane-dense padded)
    ]

    kernel = functools.partial(_encoder_stack_kernel, nhead=nh, eps=1e-5)
    return pl.pallas_call(
        kernel,
        out_shape=jax.ShapeDtypeStruct((B, S, OUT_PAD), jnp.float32),
        grid=(B, L),
        in_specs=in_specs,
        out_specs=pl.BlockSpec((None, S, OUT_PAD), lambda b, l: (b, 0, 0)),
        scratch_shapes=[pltpu.VMEM((S, d), jnp.float32)],   # x resident across layers
        compiler_params=pltpu.CompilerParams(
            dimension_semantics=("parallel", "arbitrary"),   # batch parallel, layers sequential
            vmem_limit_bytes=_vmem_limit_bytes(S, d, dff, nh)),
    )(x0, params["wq"], params["wk"], params["wv"],
      params["bq"], params["bk"], params["bv"],
      params["wo"], params["bo"], params["ln1_g"], params["ln1_b"],
      params["w_ff1"], params["b_ff1"], params["w_ff2"], params["b_ff2"],
      params["ln2_g"], params["ln2_b"], params["out_w"], params["out_b"])


# ------------------------------ JAX glue ----------------------------------

def positional_encoding_2d(C, H, W):
    """Replicates PositionalEncoding2D, vectorized (no per-channel loop)."""
    half = (C + 1) // 2
    y_pos = jnp.broadcast_to(jnp.arange(H, dtype=jnp.float32)[:, None], (H, W))
    x_pos = jnp.broadcast_to(jnp.arange(W, dtype=jnp.float32)[None, :], (H, W))
    div = jnp.exp(jnp.arange(0, C, 2, dtype=jnp.float32) * -(math.log(10000.0) / C))
    pe_sin = jnp.sin(x_pos[None, :, :] * div[:, None, None])   # (half, H, W)
    pe_cos = jnp.cos(y_pos[None, :, :] * div[:, None, None])   # (half, H, W)
    pe = jnp.stack([pe_sin, pe_cos], axis=1).reshape(2 * half, H, W)[:C]
    return pe                                                   # (C, H, W)


def bilinear_resize_matrix(n_in, n_out):
    """(n_out, n_in) dense 2-tap bilinear interpolation matrix, half-pixel
    centers (cv2 INTER_LINEAR / F.interpolate(align_corners=False)).
    Gather-free resize: out = M_rows @ img @ M_cols.T."""
    scale = n_in / n_out
    pos = (jnp.arange(n_out, dtype=jnp.float32) + 0.5) * scale - 0.5
    i0f = jnp.floor(pos)
    w1 = pos - i0f
    w0 = 1.0 - w1
    i0 = jnp.clip(i0f, 0, n_in - 1).astype(jnp.int32)
    i1 = jnp.clip(i0f + 1, 0, n_in - 1).astype(jnp.int32)
    oh0 = jax.nn.one_hot(i0, n_in, dtype=jnp.float32)
    oh1 = jax.nn.one_hot(i1, n_in, dtype=jnp.float32)
    return w0[:, None] * oh0 + w1[:, None] * oh1


def init_params(key, d_model, nhead, num_layers, d_ff):
    """Layer-stacked, head-major parameters; matmul weights in bf16 (MXU)."""
    d, L, dff = d_model, num_layers, d_ff
    dh = d // nhead
    ks = jax.random.split(key, 8)

    def dense(k, shape, fan_in):
        return (jax.random.normal(k, shape, jnp.float32)
                / math.sqrt(fan_in)).astype(jnp.bfloat16)

    out_w = jnp.zeros((d, OUT_PAD), jnp.float32)
    out_w = out_w.at[:, :2].set(
        jax.random.normal(ks[1], (d, 2), jnp.float32) / math.sqrt(d))
    return {
        # input / output 1x1 conv projections
        "in_w": jax.random.normal(ks[0], (2, d), jnp.float32) / math.sqrt(2.0),
        "in_b": jnp.zeros((1, d), jnp.float32),
        "out_w": out_w.astype(jnp.bfloat16),          # padded: only first 2 cols used
        "out_b": jnp.zeros((1, OUT_PAD), jnp.float32),
        # attention (head-major layouts)
        "wq": dense(ks[2], (L, nhead, d, dh), d),
        "wk": dense(ks[3], (L, nhead, d, dh), d),
        "wv": dense(ks[4], (L, nhead, d, dh), d),
        "bq": jnp.zeros((L, nhead, 1, dh), jnp.float32),
        "bk": jnp.zeros((L, nhead, 1, dh), jnp.float32),
        "bv": jnp.zeros((L, nhead, 1, dh), jnp.float32),
        "wo": dense(ks[5], (L, nhead, dh, d), d),     # per-head slabs of out-proj
        "bo": jnp.zeros((L, 1, d), jnp.float32),
        # layernorms
        "ln1_g": jnp.ones((L, 1, d), jnp.float32),
        "ln1_b": jnp.zeros((L, 1, d), jnp.float32),
        "ln2_g": jnp.ones((L, 1, d), jnp.float32),
        "ln2_b": jnp.zeros((L, 1, d), jnp.float32),
        # feed-forward
        "w_ff1": dense(ks[6], (L, d, dff), d),
        "b_ff1": jnp.zeros((L, 1, dff), jnp.float32),
        "w_ff2": dense(ks[7], (L, dff, d), dff),
        "b_ff2": jnp.zeros((L, 1, d), jnp.float32),
    }


def flow_refiner_forward(flows, params, pe_tok, cfg):
    """flows: (B, H, W, 2) -> refined flows (B, H, W, 2).
    B=1 reproduces the original single-flow module forward; batching simply
    applies the module independently per element (and feeds the parallel
    batch grid axis / both TCs on v7x)."""
    B, H, W, _ = flows.shape
    f = cfg["downscale_factor"]
    d = cfg["d_model"]
    nH, nW = H // f, W // f
    S = nH * nW

    # --- cv2.resize(INTER_LINEAR) downsample as two dense interpolation matmuls ---
    ry_dn = bilinear_resize_matrix(H, nH)                     # (nH, H)
    rx_dn = bilinear_resize_matrix(W, nW)                     # (nW, W)
    flow_ds = jnp.einsum('oh,bhwc->bowc', ry_dn, flows)
    flow_ds = jnp.einsum('pw,bowc->bopc', rx_dn, flow_ds)     # (B, nH, nW, 2)

    # --- input_proj (1x1 conv, K=2) + 2D positional encoding, hoisted to XLA ---
    x_tok = flow_ds.reshape(B, S, 2)
    x0 = x_tok @ params["in_w"] + params["in_b"] + pe_tok[None]   # (B, S, d) f32

    # --- transformer stack + fused output_proj: one Pallas kernel ---
    y_pad = fused_encoder_stack(x0, params, cfg)              # (B, S, 128) lane-dense
    y = y_pad[:, :, :2].reshape(B, nH, nW, 2)

    # --- F.interpolate(bilinear, align_corners=False) upsample, matmul form ---
    ry_up = bilinear_resize_matrix(nH, H)                     # (H, nH)
    rx_up = bilinear_resize_matrix(nW, W)                     # (W, nW)
    out = jnp.einsum('ho,bowc->bhwc', ry_up, y)
    out = jnp.einsum('wp,bhpc->bhwc', rx_up, out)             # (B, H, W, 2)
    return out


if __name__ == "__main__":
    cfg = dict(d_model=32, nhead=4, num_layers=2, d_ff=64, downscale_factor=4)
    B, H, W = 2, 32, 32

    key = jax.random.PRNGKey(0)
    k_flow, k_params = jax.random.split(key)
    flows = jax.random.normal(k_flow, (B, H, W, 2), jnp.float32)
    params = init_params(k_params, cfg["d_model"], cfg["nhead"],
                         cfg["num_layers"], cfg["d_ff"])

    # Positional encoding precomputed ONCE (hoisted out of the traced forward).
    nH, nW = H // cfg["downscale_factor"], W // cfg["downscale_factor"]
    pe_tok = positional_encoding_2d(cfg["d_model"], nH, nW).reshape(
        cfg["d_model"], nH * nW).T                            # (S, d)

    fwd = jax.jit(lambda fl: flow_refiner_forward(fl, params, pe_tok, cfg))
    out = jax.block_until_ready(fwd(flows))

    assert out.shape == (B, H, W, 2) and out.dtype == jnp.float32
    assert bool(jnp.all(jnp.isfinite(out)))
    print("KERNEL_OK")
</pallas_src>

<mosaic_0001>
module attributes {stable_mosaic.version = 11 : i64} {
  func.func @_encoder_stack_kernel(%arg0: i32, %arg1: i32, %arg2: memref<1x64x32xf32, #tpu.memory_space<vmem>>, %arg3: memref<1x4x32x8xbf16, #tpu.memory_space<vmem>>, %arg4: memref<1x4x32x8xbf16, #tpu.memory_space<vmem>>, %arg5: memref<1x4x32x8xbf16, #tpu.memory_space<vmem>>, %arg6: memref<1x4x1x8xf32, #tpu.memory_space<vmem>>, %arg7: memref<1x4x1x8xf32, #tpu.memory_space<vmem>>, %arg8: memref<1x4x1x8xf32, #tpu.memory_space<vmem>>, %arg9: memref<1x4x8x32xbf16, #tpu.memory_space<vmem>>, %arg10: memref<1x1x32xf32, #tpu.memory_space<vmem>>, %arg11: memref<1x1x32xf32, #tpu.memory_space<vmem>>, %arg12: memref<1x1x32xf32, #tpu.memory_space<vmem>>, %arg13: memref<1x32x64xbf16, #tpu.memory_space<vmem>>, %arg14: memref<1x1x64xf32, #tpu.memory_space<vmem>>, %arg15: memref<1x64x32xbf16, #tpu.memory_space<vmem>>, %arg16: memref<1x1x32xf32, #tpu.memory_space<vmem>>, %arg17: memref<1x1x32xf32, #tpu.memory_space<vmem>>, %arg18: memref<1x1x32xf32, #tpu.memory_space<vmem>>, %arg19: memref<32x128xbf16, #tpu.memory_space<vmem>>, %arg20: memref<1x128xf32, #tpu.memory_space<vmem>>, %arg21: memref<1x64x128xf32, #tpu.memory_space<vmem>>, %arg22: memref<64x32xf32, #tpu.memory_space<vmem>>) attributes {dimension_semantics = [#tpu.dimension_semantics<parallel>, #tpu.dimension_semantics<arbitrary>], iteration_bounds = array<i64: 2, 2>, scalar_prefetch = 0 : i64, scratch_operands = 1 : i64, tpu.core_type = #tpu.core_type<tc>, window_params = [{transform_indices = @transform_0, window_bounds = array<i64: 1, 64, 32>}, {transform_indices = @transform_1, window_bounds = array<i64: 1, 4, 32, 8>}, {transform_indices = @transform_2, window_bounds = array<i64: 1, 4, 32, 8>}, {transform_indices = @transform_3, window_bounds = array<i64: 1, 4, 32, 8>}, {transform_indices = @transform_4, window_bounds = array<i64: 1, 4, 1, 8>}, {transform_indices = @transform_5, window_bounds = array<i64: 1, 4, 1, 8>}, {transform_indices = @transform_6, window_bounds = array<i64: 1, 4, 1, 8>}, {transform_indices = @transform_7, window_bounds = array<i64: 1, 4, 8, 32>}, {transform_indices = @transform_8, window_bounds = array<i64: 1, 1, 32>}, {transform_indices = @transform_9, window_bounds = array<i64: 1, 1, 32>}, {transform_indices = @transform_10, window_bounds = array<i64: 1, 1, 32>}, {transform_indices = @transform_11, window_bounds = array<i64: 1, 32, 64>}, {transform_indices = @transform_12, window_bounds = array<i64: 1, 1, 64>}, {transform_indices = @transform_13, window_bounds = array<i64: 1, 64, 32>}, {transform_indices = @transform_14, window_bounds = array<i64: 1, 1, 32>}, {transform_indices = @transform_15, window_bounds = array<i64: 1, 1, 32>}, {transform_indices = @transform_16, window_bounds = array<i64: 1, 1, 32>}, {pipeline_mode = #tpu.pipeline_mode<synchronous>, transform_indices = @transform_17, window_bounds = array<i64: 32, 128>}, {pipeline_mode = #tpu.pipeline_mode<synchronous>, transform_indices = @transform_18, window_bounds = array<i64: 1, 128>}, {transform_indices = @transform_19, window_bounds = array<i64: 1, 64, 128>}]} {
    %c0_i32 = arith.constant 0 : i32
    %0 = arith.cmpi eq, %arg1, %c0_i32 : i32
    %1 = arith.extui %0 : i1 to i32
    %c0_i32_0 = arith.constant 0 : i32
    %2 = arith.cmpi ne, %1, %c0_i32_0 : i32
    scf.if %2 {
      %c0_48 = arith.constant 0 : index
      %c0_49 = arith.constant 0 : index
      %c0_50 = arith.constant 0 : index
      %86 = vector.load %arg2[%c0_48, %c0_49, %c0_50] : memref<1x64x32xf32, #tpu.memory_space<vmem>>, vector<1x64x32xf32>
      %87 = vector.shape_cast %86 : vector<1x64x32xf32> to vector<64x32xf32>
      %c0_51 = arith.constant 0 : index
      %c0_52 = arith.constant 0 : index
      %88 = vector.load %arg22[%c0_51, %c0_52] : memref<64x32xf32, #tpu.memory_space<vmem>>, vector<64x32xf32>
      tpu.vector_store %arg22[%c0_51, %c0_52], %87 {strides = array<i32>} : memref<64x32xf32, #tpu.memory_space<vmem>>, vector<64x32xf32>,
    } else {
    }
    %c0 = arith.constant 0 : index
    %c0_1 = arith.constant 0 : index
    %3 = vector.load %arg22[%c0, %c0_1] : memref<64x32xf32, #tpu.memory_space<vmem>>, vector<64x32xf32>
    %4 = arith.truncf %3 : vector<64x32xf32> to vector<64x32xbf16>
    %cst = arith.constant 0.000000e+00 : f32
    %5 = vector.broadcast %cst : f32 to vector<64x32xf32>
    %c0_i32_2 = arith.constant 0 : i32
    %c4_i32 = arith.constant 4 : i32
    %6 = arith.addi %c0_i32_2, %c4_i32 : i32
    %c1_i32 = arith.constant 1 : i32
    %7 = scf.for %arg23 = %c0_i32_2 to %6 step %c1_i32 iter_args(%arg24 = %5) -> (vector<64x32xf32>)  : i32 {
      %c0_48 = arith.constant 0 : index
      %86 = arith.index_cast %arg23 : i32 to index
      %c0_49 = arith.constant 0 : index
      %c0_50 = arith.constant 0 : index
      %87 = vector.load %arg3[%c0_48, %86, %c0_49, %c0_50] : memref<1x4x32x8xbf16, #tpu.memory_space<vmem>>, vector<1x1x32x8xbf16>
      %88 = vector.shape_cast %87 : vector<1x1x32x8xbf16> to vector<32x8xbf16>
      %cst_51 = arith.constant dense<0.000000e+00> : vector<64x8xf32>
      %89 = tpu.matmul %4, %88, %cst_51 {dimension_numbers = #tpu.dot_dimension_numbers<[1], [0], [0], [1], [0, 0, 1, 1], [], []>} : vector<64x32xbf16>, vector<32x8xbf16>, vector<64x8xf32> -> vector<64x8xf32>
      %c0_52 = arith.constant 0 : index
      %90 = arith.index_cast %arg23 : i32 to index
      %c0_53 = arith.constant 0 : index
      %c0_54 = arith.constant 0 : index
      %91 = vector.load %arg6[%c0_52, %90, %c0_53, %c0_54] : memref<1x4x1x8xf32, #tpu.memory_space<vmem>>, vector<1x1x1x8xf32>
      %92 = vector.shape_cast %91 : vector<1x1x1x8xf32> to vector<1x8xf32>
      %93 = vector.broadcast %92 : vector<1x8xf32> to vector<64x8xf32>
      %94 = arith.addf %89, %93 : vector<64x8xf32>
      %cst_55 = arith.constant 0.353553385 : f32
      %95 = vector.broadcast %cst_55 : f32 to vector<64x8xf32>
      %96 = arith.mulf %94, %95 : vector<64x8xf32>
      %c0_56 = arith.constant 0 : index
      %97 = arith.index_cast %arg23 : i32 to index
      %c0_57 = arith.constant 0 : index
      %c0_58 = arith.constant 0 : index
      %98 = vector.load %arg4[%c0_56, %97, %c0_57, %c0_58] : memref<1x4x32x8xbf16, #tpu.memory_space<vmem>>, vector<1x1x32x8xbf16>
      %99 = vector.shape_cast %98 : vector<1x1x32x8xbf16> to vector<32x8xbf16>
      %cst_59 = arith.constant dense<0.000000e+00> : vector<64x8xf32>
      %100 = tpu.matmul %4, %99, %cst_59 {dimension_numbers = #tpu.dot_dimension_numbers<[1], [0], [0], [1], [0, 0, 1, 1], [], []>} : vector<64x32xbf16>, vector<32x8xbf16>, vector<64x8xf32> -> vector<64x8xf32>
      %c0_60 = arith.constant 0 : index
      %101 = arith.index_cast %arg23 : i32 to index
      %c0_61 = arith.constant 0 : index
      %c0_62 = arith.constant 0 : index
      %102 = vector.load %arg7[%c0_60, %101, %c0_61, %c0_62] : memref<1x4x1x8xf32, #tpu.memory_space<vmem>>, vector<1x1x1x8xf32>
      %103 = vector.shape_cast %102 : vector<1x1x1x8xf32> to vector<1x8xf32>
      %104 = vector.broadcast %103 : vector<1x8xf32> to vector<64x8xf32>
      %105 = arith.addf %100, %104 : vector<64x8xf32>
      %c0_63 = arith.constant 0 : index
      %106 = arith.index_cast %arg23 : i32 to index
      %c0_64 = arith.constant 0 : index
      %c0_65 = arith.constant 0 : index
      %107 = vector.load %arg5[%c0_63, %106, %c0_64, %c0_65] : memref<1x4x32x8xbf16, #tpu.memory_space<vmem>>, vector<1x1x32x8xbf16>
      %108 = vector.shape_cast %107 : vector<1x1x32x8xbf16> to vector<32x8xbf16>
      %cst_66 = arith.constant dense<0.000000e+00> : vector<64x8xf32>
      %109 = tpu.matmul %4, %108, %cst_66 {dimension_numbers = #tpu.dot_dimension_numbers<[1], [0], [0], [1], [0, 0, 1, 1], [], []>} : vector<64x32xbf16>, vector<32x8xbf16>, vector<64x8xf32> -> vector<64x8xf32>
      %c0_67 = arith.constant 0 : index
      %110 = arith.index_cast %arg23 : i32 to index
      %c0_68 = arith.constant 0 : index
      %c0_69 = arith.constant 0 : index
      %111 = vector.load %arg8[%c0_67, %110, %c0_68, %c0_69] : memref<1x4x1x8xf32, #tpu.memory_space<vmem>>, vector<1x1x1x8xf32>
      %112 = vector.shape_cast %111 : vector<1x1x1x8xf32> to vector<1x8xf32>
      %113 = vector.broadcast %112 : vector<1x8xf32> to vector<64x8xf32>
      %114 = arith.addf %109, %113 : vector<64x8xf32>
      %115 = arith.truncf %96 : vector<64x8xf32> to vector<64x8xbf16>
      %116 = arith.truncf %105 : vector<64x8xf32> to vector<64x8xbf16>
      %cst_70 = arith.constant dense<0.000000e+00> : vector<64x64xf32>
      %117 = tpu.matmul %115, %116, %cst_70 {dimension_numbers = #tpu.dot_dimension_numbers<[1], [1], [0], [0], [0, 0, 1, 0], [], []>} : vector<64x8xbf16>, vector<64x8xbf16>, vector<64x64xf32> -> vector<64x64xf32>
      %cst_71 = arith.constant dense<0xFF800000> : vector<64xf32>
      %118 = vector.multi_reduction <maximumf>, %117, %cst_71 [1] : vector<64x64xf32> to vector<64xf32>
      %119 = vector.shape_cast %118 : vector<64xf32> to vector<64x1xf32>
      %120 = vector.broadcast %119 : vector<64x1xf32> to vector<64x64xf32>
      %121 = arith.subf %117, %120 : vector<64x64xf32>
      %122 = math.exp %121 : vector<64x64xf32>
      %cst_72 = arith.constant dense<0.000000e+00> : vector<64xf32>
      %123 = vector.multi_reduction <add>, %122, %cst_72 [1] : vector<64x64xf32> to vector<64xf32>
      %124 = vector.shape_cast %123 : vector<64xf32> to vector<64x1xf32>
      %125 = arith.truncf %122 : vector<64x64xf32> to vector<64x64xbf16>
      %126 = arith.truncf %114 : vector<64x8xf32> to vector<64x8xbf16>
      %cst_73 = arith.constant dense<0.000000e+00> : vector<64x8xf32>
      %127 = tpu.matmul %125, %126, %cst_73 {dimension_numbers = #tpu.dot_dimension_numbers<[1], [0], [0], [1], [0, 0, 1, 1], [], []>} : vector<64x64xbf16>, vector<64x8xbf16>, vector<64x8xf32> -> vector<64x8xf32>
      %128 = tpu.reciprocal %124 {approx = true} : vector<64x1xf32> -> vector<64x1xf32>
      %129 = vector.broadcast %128 : vector<64x1xf32> to vector<64x8xf32>
      %130 = arith.mulf %127, %129 : vector<64x8xf32>
      %131 = arith.truncf %130 : vector<64x8xf32> to vector<64x8xbf16>
      %c0_74 = arith.constant 0 : index
      %132 = arith.index_cast %arg23 : i32 to index
      %c0_75 = arith.constant 0 : index
      %c0_76 = arith.constant 0 : index
      %133 = vector.load %arg9[%c0_74, %132, %c0_75, %c0_76] : memref<1x4x8x32xbf16, #tpu.memory_space<vmem>>, vector<1x1x8x32xbf16>
      %134 = vector.shape_cast %133 : vector<1x1x8x32xbf16> to vector<8x32xbf16>
      %cst_77 = arith.constant dense<0.000000e+00> : vector<64x32xf32>
      %135 = tpu.matmul %131, %134, %cst_77 {dimension_numbers = #tpu.dot_dimension_numbers<[1], [0], [0], [1], [0, 0, 1, 1], [], []>} : vector<64x8xbf16>, vector<8x32xbf16>, vector<64x32xf32> -> vector<64x32xf32>
      %136 = arith.addf %arg24, %135 : vector<64x32xf32>
      scf.yield %136 : vector<64x32xf32>
    }
    %c4_i32_3 = arith.constant 4 : i32
    %c0_4 = arith.constant 0 : index
    %c0_5 = arith.constant 0 : index
    %c0_6 = arith.constant 0 : index
    %8 = vector.load %arg10[%c0_4, %c0_5, %c0_6] : memref<1x1x32xf32, #tpu.memory_space<vmem>>, vector<1x1x32xf32>
    %9 = vector.shape_cast %8 : vector<1x1x32xf32> to vector<1x32xf32>
    %10 = vector.broadcast %9 : vector<1x32xf32> to vector<64x32xf32>
    %11 = arith.addf %7, %10 : vector<64x32xf32>
    %12 = arith.addf %3, %11 : vector<64x32xf32>
    %c0_7 = arith.constant 0 : index
    %c0_8 = arith.constant 0 : index
    %c0_9 = arith.constant 0 : index
    %13 = vector.load %arg11[%c0_7, %c0_8, %c0_9] : memref<1x1x32xf32, #tpu.memory_space<vmem>>, vector<1x1x32xf32>
    %14 = vector.shape_cast %13 : vector<1x1x32xf32> to vector<1x32xf32>
    %c0_10 = arith.constant 0 : index
    %c0_11 = arith.constant 0 : index
    %c0_12 = arith.constant 0 : index
    %15 = vector.load %arg12[%c0_10, %c0_11, %c0_12] : memref<1x1x32xf32, #tpu.memory_space<vmem>>, vector<1x1x32xf32>
    %16 = vector.shape_cast %15 : vector<1x1x32xf32> to vector<1x32xf32>
    %cst_13 = arith.constant dense<0.000000e+00> : vector<64xf32>
    %17 = vector.multi_reduction <add>, %12, %cst_13 [1] : vector<64x32xf32> to vector<64xf32>
    %18 = vector.shape_cast %17 : vector<64xf32> to vector<64x1xf32>
    %cst_14 = arith.constant 3.200000e+01 : f32
    %19 = vector.broadcast %cst_14 : f32 to vector<64x1xf32>
    %20 = arith.divf %18, %19 : vector<64x1xf32>
    %21 = vector.broadcast %20 : vector<64x1xf32> to vector<64x32xf32>
    %22 = arith.subf %12, %21 : vector<64x32xf32>
    %23 = arith.mulf %22, %22 : vector<64x32xf32>
    %cst_15 = arith.constant dense<0.000000e+00> : vector<64xf32>
    %24 = vector.multi_reduction <add>, %23, %cst_15 [1] : vector<64x32xf32> to vector<64xf32>
    %25 = vector.shape_cast %24 : vector<64xf32> to vector<64x1xf32>
    %cst_16 = arith.constant 3.200000e+01 : f32
    %26 = vector.broadcast %cst_16 : f32 to vector<64x1xf32>
    %27 = arith.divf %25, %26 : vector<64x1xf32>
    %cst_17 = arith.constant 9.99999974E-6 : f32
    %28 = vector.broadcast %cst_17 : f32 to vector<64x1xf32>
    %29 = arith.addf %27, %28 : vector<64x1xf32>
    %30 = math.rsqrt %29 : vector<64x1xf32>
    %31 = vector.broadcast %30 : vector<64x1xf32> to vector<64x32xf32>
    %32 = arith.mulf %22, %31 : vector<64x32xf32>
    %33 = vector.broadcast %14 : vector<1x32xf32> to vector<64x32xf32>
    %34 = arith.mulf %32, %33 : vector<64x32xf32>
    %35 = vector.broadcast %16 : vector<1x32xf32> to vector<64x32xf32>
    %36 = arith.addf %34, %35 : vector<64x32xf32>
    %37 = arith.truncf %36 : vector<64x32xf32> to vector<64x32xbf16>
    %c0_18 = arith.constant 0 : index
    %c0_19 = arith.constant 0 : index
    %c0_20 = arith.constant 0 : index
    %38 = vector.load %arg13[%c0_18, %c0_19, %c0_20] : memref<1x32x64xbf16, #tpu.memory_space<vmem>>, vector<1x32x64xbf16>
    %39 = vector.shape_cast %38 : vector<1x32x64xbf16> to vector<32x64xbf16>
    %cst_21 = arith.constant dense<0.000000e+00> : vector<64x64xf32>
    %40 = tpu.matmul %37, %39, %cst_21 {dimension_numbers = #tpu.dot_dimension_numbers<[1], [0], [0], [1], [0, 0, 1, 1], [], []>} : vector<64x32xbf16>, vector<32x64xbf16>, vector<64x64xf32> -> vector<64x64xf32>
    %c0_22 = arith.constant 0 : index
    %c0_23 = arith.constant 0 : index
    %c0_24 = arith.constant 0 : index
    %41 = vector.load %arg14[%c0_22, %c0_23, %c0_24] : memref<1x1x64xf32, #tpu.memory_space<vmem>>, vector<1x1x64xf32>
    %42 = vector.shape_cast %41 : vector<1x1x64xf32> to vector<1x64xf32>
    %43 = vector.broadcast %42 : vector<1x64xf32> to vector<64x64xf32>
    %44 = arith.addf %40, %43 : vector<64x64xf32>
    %cst_25 = arith.constant 0.000000e+00 : f32
    %45 = vector.broadcast %cst_25 : f32 to vector<64x64xf32>
    %46 = arith.maximumf %44, %45 : vector<64x64xf32>
    %47 = arith.truncf %46 : vector<64x64xf32> to vector<64x64xbf16>
    %c0_26 = arith.constant 0 : index
    %c0_27 = arith.constant 0 : index
    %c0_28 = arith.constant 0 : index
    %48 = vector.load %arg15[%c0_26, %c0_27, %c0_28] : memref<1x64x32xbf16, #tpu.memory_space<vmem>>, vector<1x64x32xbf16>
    %49 = vector.shape_cast %48 : vector<1x64x32xbf16> to vector<64x32xbf16>
    %cst_29 = arith.constant dense<0.000000e+00> : vector<64x32xf32>
    %50 = tpu.matmul %47, %49, %cst_29 {dimension_numbers = #tpu.dot_dimension_numbers<[1], [0], [0], [1], [0, 0, 1, 1], [], []>} : vector<64x64xbf16>, vector<64x32xbf16>, vector<64x32xf32> -> vector<64x32xf32>
    %c0_30 = arith.constant 0 : index
    %c0_31 = arith.constant 0 : index
    %c0_32 = arith.constant 0 : index
    %51 = vector.load %arg16[%c0_30, %c0_31, %c0_32] : memref<1x1x32xf32, #tpu.memory_space<vmem>>, vector<1x1x32xf32>
    %52 = vector.shape_cast %51 : vector<1x1x32xf32> to vector<1x32xf32>
    %53 = vector.broadcast %52 : vector<1x32xf32> to vector<64x32xf32>
    %54 = arith.addf %50, %53 : vector<64x32xf32>
    %55 = arith.addf %36, %54 : vector<64x32xf32>
    %c0_33 = arith.constant 0 : index
    %c0_34 = arith.constant 0 : index
    %c0_35 = arith.constant 0 : index
    %56 = vector.load %arg17[%c0_33, %c0_34, %c0_35] : memref<1x1x32xf32, #tpu.memory_space<vmem>>, vector<1x1x32xf32>
    %57 = vector.shape_cast %56 : vector<1x1x32xf32> to vector<1x32xf32>
    %c0_36 = arith.constant 0 : index
    %c0_37 = arith.constant 0 : index
    %c0_38 = arith.constant 0 : index
    %58 = vector.load %arg18[%c0_36, %c0_37, %c0_38] : memref<1x1x32xf32, #tpu.memory_space<vmem>>, vector<1x1x32xf32>
    %59 = vector.shape_cast %58 : vector<1x1x32xf32> to vector<1x32xf32>
    %cst_39 = arith.constant dense<0.000000e+00> : vector<64xf32>
    %60 = vector.multi_reduction <add>, %55, %cst_39 [1] : vector<64x32xf32> to vector<64xf32>
    %61 = vector.shape_cast %60 : vector<64xf32> to vector<64x1xf32>
    %cst_40 = arith.constant 3.200000e+01 : f32
    %62 = vector.broadcast %cst_40 : f32 to vector<64x1xf32>
    %63 = arith.divf %61, %62 : vector<64x1xf32>
    %64 = vector.broadcast %63 : vector<64x1xf32> to vector<64x32xf32>
    %65 = arith.subf %55, %64 : vector<64x32xf32>
    %66 = arith.mulf %65, %65 : vector<64x32xf32>
    %cst_41 = arith.constant dense<0.000000e+00> : vector<64xf32>
    %67 = vector.multi_reduction <add>, %66, %cst_41 [1] : vector<64x32xf32> to vector<64xf32>
    %68 = vector.shape_cast %67 : vector<64xf32> to vector<64x1xf32>
    %cst_42 = arith.constant 3.200000e+01 : f32
    %69 = vector.broadcast %cst_42 : f32 to vector<64x1xf32>
    %70 = arith.divf %68, %69 : vector<64x1xf32>
    %cst_43 = arith.constant 9.99999974E-6 : f32
    %71 = vector.broadcast %cst_43 : f32 to vector<64x1xf32>
    %72 = arith.addf %70, %71 : vector<64x1xf32>
    %73 = math.rsqrt %72 : vector<64x1xf32>
    %74 = vector.broadcast %73 : vector<64x1xf32> to vector<64x32xf32>
    %75 = arith.mulf %65, %74 : vector<64x32xf32>
    %76 = vector.broadcast %57 : vector<1x32xf32> to vector<64x32xf32>
    %77 = arith.mulf %75, %76 : vector<64x32xf32>
    %78 = vector.broadcast %59 : vector<1x32xf32> to vector<64x32xf32>
    %79 = arith.addf %77, %78 : vector<64x32xf32>
    %c1_i32_44 = arith.constant 1 : i32
    %80 = arith.cmpi slt, %arg1, %c1_i32_44 : i32
    %81 = arith.extui %80 : i1 to i32
    %c0_i32_45 = arith.constant 0 : i32
    %82 = arith.cmpi ne, %81, %c0_i32_45 : i32
    scf.if %82 {
      %c0_48 = arith.constant 0 : index
      %c0_49 = arith.constant 0 : index
      %86 = vector.load %arg22[%c0_48, %c0_49] : memref<64x32xf32, #tpu.memory_space<vmem>>, vector<64x32xf32>
      tpu.vector_store %arg22[%c0_48, %c0_49], %79 {strides = array<i32>} : memref<64x32xf32, #tpu.memory_space<vmem>>, vector<64x32xf32>,
    } else {
    }
    %c1_i32_46 = arith.constant 1 : i32
    %83 = arith.cmpi eq, %arg1, %c1_i32_46 : i32
    %84 = arith.extui %83 : i1 to i32
    %c0_i32_47 = arith.constant 0 : i32
    %85 = arith.cmpi ne, %84, %c0_i32_47 : i32
    scf.if %85 {
      %86 = arith.truncf %79 : vector<64x32xf32> to vector<64x32xbf16>
      %c0_48 = arith.constant 0 : index
      %c0_49 = arith.constant 0 : index
      %87 = vector.load %arg19[%c0_48, %c0_49] : memref<32x128xbf16, #tpu.memory_space<vmem>>, vector<32x128xbf16>
      %cst_50 = arith.constant dense<0.000000e+00> : vector<64x128xf32>
      %88 = tpu.matmul %86, %87, %cst_50 {dimension_numbers = #tpu.dot_dimension_numbers<[1], [0], [0], [1], [0, 0, 1, 1], [], []>} : vector<64x32xbf16>, vector<32x128xbf16>, vector<64x128xf32> -> vector<64x128xf32>
      %c0_51 = arith.constant 0 : index
      %c0_52 = arith.constant 0 : index
      %89 = vector.load %arg20[%c0_51, %c0_52] : memref<1x128xf32, #tpu.memory_space<vmem>>, vector<1x128xf32>
      %90 = vector.broadcast %89 : vector<1x128xf32> to vector<64x128xf32>
      %91 = arith.addf %88, %90 : vector<64x128xf32>
      %c0_53 = arith.constant 0 : index
      %c0_54 = arith.constant 0 : index
      %c0_55 = arith.constant 0 : index
      %92 = vector.load %arg21[%c0_53, %c0_54, %c0_55] : memref<1x64x128xf32, #tpu.memory_space<vmem>>, vector<1x64x128xf32>
      %93 = vector.shape_cast %92 : vector<1x64x128xf32> to vector<64x128xf32>
      %94 = vector.shape_cast %91 : vector<64x128xf32> to vector<1x64x128xf32>
      tpu.vector_store %arg21[%c0_53, %c0_54, %c0_55], %94 {strides = array<i32>} : memref<1x64x128xf32, #tpu.memory_space<vmem>>, vector<1x64x128xf32>,
    } else {
    }
    return
  }
  func.func @transform_0(%arg0: i32, %arg1: i32) -> (i32, i32, i32) {
    %c0_i32 = arith.constant 0 : i32
    %c0_i32_0 = arith.constant 0 : i32
    %c0_i32_1 = arith.constant 0 : i32
    return %arg0, %c0_i32, %c0_i32_0 : i32, i32, i32
  }
  func.func @transform_1(%arg0: i32, %arg1: i32) -> (i32, i32, i32, i32) {
    %c0_i32 = arith.constant 0 : i32
    %c0_i32_0 = arith.constant 0 : i32
    %c0_i32_1 = arith.constant 0 : i32
    %c0_i32_2 = arith.constant 0 : i32
    return %arg1, %c0_i32, %c0_i32_0, %c0_i32_1 : i32, i32, i32, i32
  }
  func.func @transform_2(%arg0: i32, %arg1: i32) -> (i32, i32, i32, i32) {
    %c0_i32 = arith.constant 0 : i32
    %c0_i32_0 = arith.constant 0 : i32
    %c0_i32_1 = arith.constant 0 : i32
    %c0_i32_2 = arith.constant 0 : i32
    return %arg1, %c0_i32, %c0_i32_0, %c0_i32_1 : i32, i32, i32, i32
  }
  func.func @transform_3(%arg0: i32, %arg1: i32) -> (i32, i32, i32, i32) {
    %c0_i32 = arith.constant 0 : i32
    %c0_i32_0 = arith.constant 0 : i32
    %c0_i32_1 = arith.constant 0 : i32
    %c0_i32_2 = arith.constant 0 : i32
    return %arg1, %c0_i32, %c0_i32_0, %c0_i32_1 : i32, i32, i32, i32
  }
  func.func @transform_4(%arg0: i32, %arg1: i32) -> (i32, i32, i32, i32) {
    %c0_i32 = arith.constant 0 : i32
    %c0_i32_0 = arith.constant 0 : i32
    %c0_i32_1 = arith.constant 0 : i32
    %c0_i32_2 = arith.constant 0 : i32
    return %arg1, %c0_i32, %c0_i32_0, %c0_i32_1 : i32, i32, i32, i32
  }
  func.func @transform_5(%arg0: i32, %arg1: i32) -> (i32, i32, i32, i32) {
    %c0_i32 = arith.constant 0 : i32
    %c0_i32_0 = arith.constant 0 : i32
    %c0_i32_1 = arith.constant 0 : i32
    %c0_i32_2 = arith.constant 0 : i32
    return %arg1, %c0_i32, %c0_i32_0, %c0_i32_1 : i32, i32, i32, i32
  }
  func.func @transform_6(%arg0: i32, %arg1: i32) -> (i32, i32, i32, i32) {
    %c0_i32 = arith.constant 0 : i32
    %c0_i32_0 = arith.constant 0 : i32
    %c0_i32_1 = arith.constant 0 : i32
    %c0_i32_2 = arith.constant 0 : i32
    return %arg1, %c0_i32, %c0_i32_0, %c0_i32_1 : i32, i32, i32, i32
  }
  func.func @transform_7(%arg0: i32, %arg1: i32) -> (i32, i32, i32, i32) {
    %c0_i32 = arith.constant 0 : i32
    %c0_i32_0 = arith.constant 0 : i32
    %c0_i32_1 = arith.constant 0 : i32
    %c0_i32_2 = arith.constant 0 : i32
    return %arg1, %c0_i32, %c0_i32_0, %c0_i32_1 : i32, i32, i32, i32
  }
  func.func @transform_8(%arg0: i32, %arg1: i32) -> (i32, i32, i32) {
    %c0_i32 = arith.constant 0 : i32
    %c0_i32_0 = arith.constant 0 : i32
    %c0_i32_1 = arith.constant 0 : i32
    return %arg1, %c0_i32, %c0_i32_0 : i32, i32, i32
  }
  func.func @transform_9(%arg0: i32, %arg1: i32) -> (i32, i32, i32) {
    %c0_i32 = arith.constant 0 : i32
    %c0_i32_0 = arith.constant 0 : i32
    %c0_i32_1 = arith.constant 0 : i32
    return %arg1, %c0_i32, %c0_i32_0 : i32, i32, i32
  }
  func.func @transform_10(%arg0: i32, %arg1: i32) -> (i32, i32, i32) {
    %c0_i32 = arith.constant 0 : i32
    %c0_i32_0 = arith.constant 0 : i32
    %c0_i32_1 = arith.constant 0 : i32
    return %arg1, %c0_i32, %c0_i32_0 : i32, i32, i32
  }
  func.func @transform_11(%arg0: i32, %arg1: i32) -> (i32, i32, i32) {
    %c0_i32 = arith.constant 0 : i32
    %c0_i32_0 = arith.constant 0 : i32
    %c0_i32_1 = arith.constant 0 : i32
    return %arg1, %c0_i32, %c0_i32_0 : i32, i32, i32
  }
  func.func @transform_12(%arg0: i32, %arg1: i32) -> (i32, i32, i32) {
    %c0_i32 = arith.constant 0 : i32
    %c0_i32_0 = arith.constant 0 : i32
    %c0_i32_1 = arith.constant 0 : i32
    return %arg1, %c0_i32, %c0_i32_0 : i32, i32, i32
  }
  func.func @transform_13(%arg0: i32, %arg1: i32) -> (i32, i32, i32) {
    %c0_i32 = arith.constant 0 : i32
    %c0_i32_0 = arith.constant 0 : i32
    %c0_i32_1 = arith.constant 0 : i32
    return %arg1, %c0_i32, %c0_i32_0 : i32, i32, i32
  }
  func.func @transform_14(%arg0: i32, %arg1: i32) -> (i32, i32, i32) {
    %c0_i32 = arith.constant 0 : i32
    %c0_i32_0 = arith.constant 0 : i32
    %c0_i32_1 = arith.constant 0 : i32
    return %arg1, %c0_i32, %c0_i32_0 : i32, i32, i32
  }
  func.func @transform_15(%arg0: i32, %arg1: i32) -> (i32, i32, i32) {
    %c0_i32 = arith.constant 0 : i32
    %c0_i32_0 = arith.constant 0 : i32
    %c0_i32_1 = arith.constant 0 : i32
    return %arg1, %c0_i32, %c0_i32_0 : i32, i32, i32
  }
  func.func @transform_16(%arg0: i32, %arg1: i32) -> (i32, i32, i32) {
    %c0_i32 = arith.constant 0 : i32
    %c0_i32_0 = arith.constant 0 : i32
    %c0_i32_1 = arith.constant 0 : i32
    return %arg1, %c0_i32, %c0_i32_0 : i32, i32, i32
  }
  func.func @transform_17(%arg0: i32, %arg1: i32) -> (i32, i32) {
    %c0_i32 = arith.constant 0 : i32
    %c0_i32_0 = arith.constant 0 : i32
    %c0_i32_1 = arith.constant 0 : i32
    return %c0_i32, %c0_i32_0 : i32, i32
  }
  func.func @transform_18(%arg0: i32, %arg1: i32) -> (i32, i32) {
    %c0_i32 = arith.constant 0 : i32
    %c0_i32_0 = arith.constant 0 : i32
    %c0_i32_1 = arith.constant 0 : i32
    return %c0_i32, %c0_i32_0 : i32, i32
  }
  func.func @transform_19(%arg0: i32, %arg1: i32) -> (i32, i32, i32) {
    %c0_i32 = arith.constant 0 : i32
    %c0_i32_0 = arith.constant 0 : i32
    %c0_i32_1 = arith.constant 0 : i32
    return %arg0, %c0_i32, %c0_i32_0 : i32, i32, i32
  }
}

</mosaic_0001>

<bundles_post_ra>
// kernel: _lambda_.1
= control target key start
LH: loop header
LB: loop body
LE: loop exit
PB: predicated region body
PF: predicated region fallthrough
CT: control target
= control target key end

     0   :  { %s3234_s30 = smov 0   ;;  %s3236_s20 = smov 0   ;;  %s3809_s0 = inlined_call_operand.vmem [shape: f32[2,64,32], index: 0, kind: input, shape index: {}]   ;;  %s3810_s1 = inlined_call_operand.vmem [shape: bf16[2,4,32,8], index: 1, kind: input, shape index: {}]   ;;  %s3811_s2 = inlined_call_operand.vmem [shape: bf16[2,4,32,8], index: 2, kind: input, shape index: {}]   ;;  %s3812_s3 = inlined_call_operand.vmem [shape: bf16[2,4,32,8], index: 3, kind: input, shape index: {}]   ;;  %s3813_s4 = inlined_call_operand.vmem [shape: f32[2,4,1,8], index: 4, kind: input, shape index: {}, may-alias: {4,5,6}]   ;;  %s3814_s5 = inlined_call_operand.vmem [shape: f32[2,4,1,8], index: 5, kind: input, shape index: {}, may-alias: {4,5,6}]   ;;  %s3815_s6 = inlined_call_operand.vmem [shape: f32[2,4,1,8], index: 6, kind: input, shape index: {}, may-alias: {4,5,6}]   ;;  %s3816_s7 = inlined_call_operand.vmem [shape: bf16[2,4,8,32], index: 7, kind: input, shape index: {}]   ;;  %s3817_s8 = inlined_call_operand.vmem [shape: f32[2,1,32], index: 8, kind: input, shape index: {}, may-alias: {8,10,14,16}]   ;;  %s3818_s9 = inlined_call_operand.vmem [shape: f32[2,1,32], index: 9, kind: input, shape index: {}, may-alias: {9,15}]   ;;  %s3819_s10 = inlined_call_operand.vmem [shape: f32[2,1,32], index: 10, kind: input, shape index: {}, may-alias: {8,10,14,16}]   ;;  %s3820_s11 = inlined_call_operand.vmem [shape: bf16[2,32,64], index: 11, kind: input, shape index: {}]   ;;  %s3821_s12 = inlined_call_operand.vmem [shape: f32[2,1,64], index: 12, kind: input, shape index: {}]   ;;  %s3822_s13 = inlined_call_operand.vmem [shape: bf16[2,64,32], index: 13, kind: input, shape index: {}]   ;;  %s3823_s14 = inlined_call_operand.vmem [shape: f32[2,1,32], index: 14, kind: input, shape index: {}, may-alias: {8,10,14,16}]   ;;  %s3824_s15 = inlined_call_operand.vmem [shape: f32[2,1,32], index: 15, kind: input, shape index: {}, may-alias: {9,15}]   ;;  %s3825_s16 = inlined_call_operand.vmem [shape: f32[2,1,32], index: 16, kind: input, shape index: {}, may-alias: {8,10,14,16}]   ;;  %s3826_s17 = inlined_call_operand.vmem [shape: bf16[32,128], index: 17, kind: input, shape index: {}]   ;;  %s3827_s18 = inlined_call_operand.vmem [shape: f32[1,128], index: 18, kind: input, shape index: {}]   ;;  %s3828_s19 = inlined_call_operand.vmem [shape: f32[2,64,128], index: 19, kind: output, shape index: {}]  }
   0x1   :  { %3837 = sst [smem:[#allocation12_spill]] %s3809_s0  ;;  %s3232_s0 = smov 0  }
   0x2   :  { %3838 = sst [smem:[#allocation13_spill]] %s3810_s1  ;;  %s3238_s21 = smov 0  }
   0x3   :  { %3839 = sst [smem:[#allocation14_spill]] %s3811_s2  ;;  %s3240_s1 = smov 0  }
   0x4   :  { %3840 = sst [smem:[#allocation15_spill]] %s3812_s3 }
   0x5   :  { %3841 = sst [smem:[#allocation16_spill]] %s3813_s4 }
   0x6   :  { %3842 = sst [smem:[#allocation17_spill]] %s3816_s7 }
   0x7   :  { %3843 = sst [smem:[#allocation18_spill]] %s3820_s11 }
   0x8   :  { %3844 = sst [smem:[#allocation19_spill]] %s3826_s17 }
   0x9   :  { %3845 = sst [smem:[#allocation20_spill]] %s3827_s18 }
   0xa   :  { %3846 = sst [smem:[#allocation21_spill]] %s3828_s19 }
   0xb LB: > { %3847 = sst [smem:[#allocation3_spill]] %s3078_s0  ;;  %s38_s22 = sadd.s32 1, %s3086_s20  ;;  %s3094_s1 = sphi %s3240_s1, %s29_s1   ;;  %s3090_s21 = sphi %s3238_s21, %s3899_s21   ;;  %s3086_s20 = sphi %s3236_s20, %s3898_s20   ;;  %s3082_s30 = sphi %s3234_s30, %s3897_s30   ;;  %s3078_s0 = sphi %s3232_s0, %s3896_s0  }
   0xc   : > { %3848 = sst [smem:[#allocation4_spill]] %s3086_s20  ;;  %s41_s2 = sadd.s32 1, %s3090_s21 }
   0xd   : > { %3849 = sst [smem:[#allocation5_spill]] %s3090_s21  ;;  %p39_p0 = scmp.ge.s32.totalorder %s38_s22, 2 }
   0xe   : > { %3850 = sst [smem:[#allocation6_spill]] %s3094_s1  ;;  %p2538_p1 = scmp.ge.s32.totalorder %s3094_s1, 1 }
   0xf   : > { %p692_p2 = scmp.lt.s32.totalorder %s3094_s1, 5  ;;  %s3901_s22 = smov (%p39_p0, %s38_s22), 0 }
  0x10   : > { %3851 = sst [smem:[#allocation7_spill]] %s3901_s22  ;;  %s3903_s2 = smov (!%p39_p0, %s41_s2), %s3090_s21 }
  0x11   : > { %p693_p3 = pnand %p2538_p1, %p692_p2  ;;  %p43_p4 = scmp.ge.s32.totalorder %s3903_s2, 2 }
  0x13   : > { %s3905_s2 = smov (%p43_p4, %s3903_s2), 0  ;;  %696 = sbr.rel (%p693_p3) target bundleno = 2487 (0x9b7), region = 96 }
  0x14   : > { %3852 = sst [smem:[#allocation8_spill]] %s3905_s2 }
  0x1a   : > { %p811_p5 = scmp.lt.s32.totalorder %s3082_s30, 1  ;;  %p816_p6 = scmp.lt.s32.totalorder %s3078_s0, 1 }
  0x1b   : > { %s3853_s26 = sld [smem:[#allocation12_spill]]  ;;  %s3860_s7 = sld [smem:[#allocation17_spill]] }
  0x1c   : > { %s3907_s30 = smov (!%p811_p5, %s3082_s30), 1  ;;  %s3862_s11 = sld [smem:[#allocation18_spill]] }
  0x1d   : > { %s3266_s23 = scalar_select %p816_p6, %s3078_s0, 1 }
  0x1e   : > { %s2629_s24 = sshll.u32 %s3907_s30, 6  ;;  %s3864_s21 = sld [smem:[#allocation3_spill]] }
  0x1f   : > { %s3274_s28 = sshll.u32 %s3266_s23, 6  ;;  %s2633_s25 = sshll.u32 %s3266_s23, 4 }
  0x20   : > { %3855 = sst [smem:[#allocation10_spill]] %s3274_s28  ;;  %s872_s19 = scalar_lea.vmem %s3823_s14, %s3266_s23 }
  0x21   : > { %s3271_s27 = scalar_lea.vmem %s3853_s26, %s2629_s24  ;;  %s3307_s18 = scalar_lea.vmem %s3860_s7, %s2633_s25 }
  0x22   : > { %3854 = sst [smem:[#allocation9_spill]] %s3271_s27  ;;  %s3289_s27 = sshll.u32 %s3266_s23, 2 }
  0x23   : > { %3861 = sst [smem:[#allocation11_spill]] %s3307_s18  ;;  %s3324_s17 = scalar_lea.vmem %s3862_s11, %s2633_s25 }
  0x24   : > { %s2635_s18 = sshll.u32 %s3266_s23, 5  ;;  %s875_s1 = scalar_lea.vmem %s3824_s15, %s3266_s23 }
  0x25   : > { %s3338_s4 = scalar_lea.vmem %s3822_s13, %s2635_s18  ;;  %s878_s20 = scalar_lea.vmem %s3825_s16, %s3266_s23 }
  0x26   : > { %s3863_s7 = sld [smem:[#allocation21_spill]]  ;;  %p2558_p7 = scmp.ne.s32.totalorder %s3864_s21, 0 }
  0x27   : > { %s3865_s28 = sld [smem:[#allocation9_spill]] (!%p2558_p7)  ;;  %vm897_vm0 = vcmask (!%p2558_p7), 261120  }
  0x28   : > { %888 = sbr.rel (%p2558_p7) target bundleno = 50 (0x32), region = 100 }
  0x2c   : > { %s3351_s11 = scalar_lea.vmem %s3863_s7, %s2629_s24 }
  0x2d   : > { %v889_v0 = vld [vmem:[%s3865_s28] sm:$0xff] (!%p2558_p7)  ;;  %v890_v1 = vld [vmem:[%s3865_s28 + $0x8] sm:$0xff] (!%p2558_p7)  ;;  %v891_v2 = vld [vmem:[%s3865_s28 + $0x10] sm:$0xff] (!%p2558_p7) }
  0x2e   : > { %898 = vst.msk [vmem:[#allocation2] sm:$0xff] (!%p2558_p7), %vm897_vm0, %v889_v0  ;;  %899 = vst.msk [vmem:[#allocation2 + $0x8] sm:$0xff] (!%p2558_p7), %vm897_vm0, %v890_v1  ;;  %v892_v3 = vld [vmem:[%s3865_s28 + $0x18] sm:$0xff] (!%p2558_p7)  ;;  %v893_v4 = vld [vmem:[%s3865_s28 + $0x20] sm:$0xff] (!%p2558_p7) }
  0x2f   : > { %900 = vst.msk [vmem:[#allocation2 + $0x10] sm:$0xff] %vm897_vm0, %v891_v2  ;;  %v894_v5 = vld [vmem:[%s3865_s28 + $0x28] sm:$0xff]  ;;  %901 = vst.msk [vmem:[#allocation2 + $0x18] sm:$0xff] %vm897_vm0, %v892_v3  ;;  %v895_v6 = vld [vmem:[%s3865_s28 + $0x30] sm:$0xff] }
  0x30   : > { %902 = vst.msk [vmem:[#allocation2 + $0x20] sm:$0xff] %vm897_vm0, %v893_v4  ;;  %903 = vst.msk [vmem:[#allocation2 + $0x28] sm:$0xff] %vm897_vm0, %v894_v5  ;;  %v896_v7 = vld [vmem:[%s3865_s28 + $0x38] sm:$0xff] }
  0x31   : > { %904 = vst.msk [vmem:[#allocation2 + $0x30] sm:$0xff] %vm897_vm0, %v895_v6  ;;  %905 = vst.msk [vmem:[#allocation2 + $0x38] sm:$0xff] %vm897_vm0, %v896_v7 }
  0x32 PF: > { %v3394_v20 = vmov 0.0   ;;  %v3396_v21 = vmov 0.0   ;;  %v3398_v22 = vmov 0.0   ;;  %v3400_v23 = vmov 0.0   ;;  %s3410_s7 = smov 0  }
  0x33   : > { %v3402_v24 = vmov 0.0   ;;  %v3404_v25 = vmov 0.0   ;;  %v3406_v26 = vmov 0.0   ;;  %v3408_v27 = vmov 0.0  }
  0x37   : > { %v3370_v12 = vld [vmem:[#allocation2 + $0x20] sm:$0xff]  ;;  %v3372_v13 = vld [vmem:[#allocation2 + $0x28] sm:$0xff] }
  0x38   : > { %v3362_v8 = vld [vmem:[#allocation2] sm:$0xff]  ;;  %v3364_v9 = vld [vmem:[#allocation2 + $0x8] sm:$0xff]  ;;  %v3378_v15 = vld [vmem:[#allocation2 + $0x30] sm:$0xff]  ;;  %v3388_v18 = vpack.c.bf16 %v3372_v13, %v3370_v12 }
  0x39   : > { %v3366_v10 = vld [vmem:[#allocation2 + $0x10] sm:$0xff]  ;;  %v3368_v11 = vld [vmem:[#allocation2 + $0x18] sm:$0xff]  ;;  %v3376_v14 = vpack.c.bf16 %v3364_v9, %v3362_v8 }
  0x3a   : > { %v3380_v16 = vld [vmem:[#allocation2 + $0x38] sm:$0xff]  ;;  %v3384_v17 = vpack.c.bf16 %v3368_v11, %v3366_v10 }
  0x3b   : > { %v3392_v19 = vpack.c.bf16 %v3380_v16, %v3378_v15 }
  0x3c LB: >> { %s3866_s18 = sld [smem:[#allocation10_spill]]  ;;  %vm959_vm1 = vcmask 261120   ;;  %s2637_s24 = sshll.u32 %s3130_s7, 4  ;;  %vm1235_vm2 = vcmask 64512   ;;  %vm1325_vm3 = vcmask 523264   ;;  %vm1518_vm4 = vcmask 1043456   ;;  %s3130_s7 = sphi %s3410_s7, %s923_s7   ;;  %v3126_v27 = vphi %v3408_v27, %v3885_v27   ;;  %v3122_v26 = vphi %v3406_v26, %v3884_v26   ;;  %v3118_v25 = vphi %v3404_v25, %v3883_v25   ;;  %v3114_v24 = vphi %v3402_v24, %v3882_v24   ;;  %v3110_v23 = vphi %v3400_v23, %v3881_v23   ;;  %v3106_v22 = vphi %v3398_v22, %v3880_v22   ;;  %v3102_v21 = vphi %v3396_v21, %v3879_v21   ;;  %v3098_v20 = vphi %v3394_v20, %v3878_v20  }
  0x3d   : >> { %2707 = vmatprep.mubr.msk.bf16.mxu1 %vm959_vm1, %v3388_v18  ;;  %2703 = vmatprep.mubr.msk.bf16.mxu0 %vm959_vm1, %v3376_v14  ;;  %s3867_s22 = sld [smem:[#allocation13_spill]]  ;;  %s3869_s3 = sld [smem:[#allocation14_spill]] }
  0x3e   : >> { %s3875_s0 = scalar_lea.vmem %s3814_s5, %s3289_s27  ;;  %s3876_s30 = scalar_lea.vmem %s3815_s6, %s3289_s27 }
  0x3f   : >> { %s1142_s26 = scalar_lea.vmem %s3876_s30, %s3130_s7 }
  0x43   : >> { %s3868_s29 = scalar_lea.vmem %s3867_s22, %s3866_s18  ;;  %s3870_s21 = scalar_lea.vmem %s3869_s3, %s3866_s18 }
  0x44   : >> { %s934_s25 = scalar_lea.vmem %s3868_s29, %s2637_s24  ;;  %s1046_s28 = scalar_lea.vmem %s3870_s21, %s2637_s24 }
  0x45   : >> { %v2942_v28 = vld [vmem:[%s934_s25] sm:$0xff]   ;;  %v2943_v29 = vld [vmem:[%s934_s25 + $0x8] sm:$0xff]   ;;  %s3871_s22 = sld [smem:[#allocation15_spill]]  ;;  %s3873_s3 = sld [smem:[#allocation16_spill]] }
  0x46   : >> { %2817 = vmatprep.subr.bf16.mxu1 %v2942_v28  ;;  %2699 = vmatprep.subr.bf16.mxu0 %v2942_v28  ;;  %v2944_v30 = vld [vmem:[%s1046_s28] sm:$0xff]   ;;  %v2945_v31 = vld [vmem:[%s1046_s28 + $0x8] sm:$0xff]  }
  0x47   : >> { %2819 = vmatpush3.bf16.msra.mxu1 %v2942_v28  ;;  %2700 = vmatpush3.bf16.msra.mxu0 %v2942_v28 }
  0x48   : >> { %2818 = vmatprep.subr.bf16.mxu1 %v2943_v29  ;;  %2701 = vmatprep.subr.bf16.mxu0 %v2943_v29 }
  0x4b   : >> { %2820 = vmatpush3.bf16.msra.mxu1 %v2943_v29  ;;  %2702 = vmatpush3.bf16.msra.mxu0 %v2943_v29  ;;  %s3872_s29 = scalar_lea.vmem %s3871_s22, %s3866_s18  ;;  %s3874_s21 = scalar_lea.vmem %s3873_s3, %s3289_s27 }
  0x4c   : >> { %2711 = vmatprep.subr.bf16.mxu1 %v2944_v30  ;;  %s1137_s25 = scalar_lea.vmem %s3872_s29, %s2637_s24  ;;  %s939_s24 = scalar_lea.vmem %s3874_s21, %s3130_s7 }
  0x4d   : >> { %v2946_v32 = vld [vmem:[%s1137_s25] sm:$0xff]   ;;  %v2947_v33 = vld [vmem:[%s1137_s25 + $0x8] sm:$0xff]   ;;  %s1051_s22 = scalar_lea.vmem %s3875_s0, %s3130_s7  ;;  %s3877_s3 = sld [smem:[#allocation11_spill]] }
  0x4e   : >> { %2708 = vmatmul.mubr.msk.bf16.vlgmr.msra.gmra.mrb[0].mxu1 %vm959_vm1, %v3392_v19  ;;  %2704 = vmatmul.mubr.msk.bf16.vlgmr.msra.gmra.mrb[0].mxu0 %vm959_vm1, %v3384_v17  ;;  %v2561_v34 = vld [vmem:[%s939_s24] ss:$0 sm:$0xff]  ;;  %s2592_s21 = sshll.u32 %s3130_s7, 2  ;;  %s923_s7 = sadd.s32 1, %s3130_s7  }
  0x4f   : >> { %2712 = vmatpush3.bf16.msra.mxu1 %v2944_v30  ;;  %2715 = vmatprep.mubr.msk.bf16.mxu1 %vm959_vm1, %v3376_v14  ;;  %v2569_v63 = vld [vmem:[%s1051_s22] ss:$0 sm:$0xff]  ;;  %p920_p8 = scmp.ge.s32.totalorder %s923_s7, 4  }
  0x50   : >> { %2713 = vmatprep.subr.bf16.mxu1 %v2945_v31  ;;  %2727 = vmatprep.mubr.msk.bf16.mxu0 %vm959_vm1, %v3376_v14  ;;  %s3886_s0 = scalar_lea.vmem (%p920_p8), %s3817_s8, %s3266_s23  ;;  %s3887_s7 = scalar_lea.vmem (%p920_p8), %s3818_s9, %s3266_s23 }
  0x51   : >> { %2723 = vmatprep.subr.bf16.mxu0 %v2946_v32  ;;  %s3888_s29 = scalar_lea.vmem (%p920_p8), %s3819_s10, %s3266_s23 }
  0x52   : >> { %2724 = vmatpush3.bf16.msra.mxu0 %v2946_v32 }
  0x53   : >> { %2714 = vmatpush3.bf16.msra.mxu1 %v2945_v31  ;;  %2725 = vmatprep.subr.bf16.mxu0 %v2947_v33  ;;  %s1504_s24 = scalar_lea.vmem %s3877_s3, %s2592_s21 }
  0x56   : >> { %2716 = vmatmul.mubr.msk.bf16.vlgmr.msra.gmra.mrb[4].mxu1 %vm959_vm1, %v3384_v17  ;;  %2726 = vmatpush3.bf16.msra.mxu0 %v2947_v33 }
  0x57   : >> { %2719 = vmatprep.mubr.msk.bf16.mxu1 %vm959_vm1, %v3388_v18 }
  0x59   : >> { %2728 = vmatmul.mubr.msk.bf16.vlgmr.msra.gmra.mrb[4].mxu0 %vm959_vm1, %v3384_v17 }
  0x5a   : >> { %2731 = vmatprep.mubr.msk.bf16.mxu0 %vm959_vm1, %v3388_v18 }
  0x5e   : >> { %2720 = vmatmul.mubr.msk.bf16.gmra.mrb[8].mxu1 %vm959_vm1, %v3392_v19 }
  0x61   : >> { %2732 = vmatmul.mubr.msk.bf16.gmra.mrb[8].mxu0 %vm959_vm1, %v3392_v19 }
 0x121   : >> { %v2709_v35 = vpop.f32.mrb[0].mxu1  ;;  %v2705_v36 = vpop.f32.mrb[0].mxu0 }
 0x122   : >> { %v1031_v37 = vadd.f32 %v2709_v35, %v2561_v34  ;;  %v1022_v38 = vpop.f32.mrb[1].mxu1  ;;  %v1015_v39 = vadd.f32 %v2705_v36, %v2561_v34  ;;  %v1006_v40 = vpop.f32.mrb[1].mxu0 }
 0x123   : >> { %v1023_v41 = vadd.f32 %v2561_v34, %v1022_v38  ;;  %v2710_v42 = vpop.f32.mrb[2].mxu1  ;;  %v1007_v43 = vadd.f32 %v2561_v34, %v1006_v40  ;;  %v2706_v44 = vpop.f32.mrb[2].mxu0 }
 0x124   : >> { %v1034_v45 = vadd.f32 %v2710_v42, %v2561_v34  ;;  %v1025_v46 = vpop.f32.mrb[3].mxu1  ;;  %v1039_v47 = vmul.f32 0.35355338, %v1015_v39  ;;  %v1018_v48 = vadd.f32 %v2706_v44, %v2561_v34  ;;  %v1009_v49 = vpop.f32.mrb[3].mxu0  ;;  %v1043_v53 = vmul.f32 0.35355338, %v1031_v37 }
 0x125   : >> { %v1026_v50 = vadd.f32 %v2561_v34, %v1025_v46  ;;  %v1037_v51 = vmul.f32 0.35355338, %v1007_v43  ;;  %v1010_v52 = vadd.f32 %v2561_v34, %v1009_v49  ;;  %v1041_v56 = vmul.f32 0.35355338, %v1023_v41  ;;  %v2577_v44 = vld [vmem:[%s1142_s26] ss:$0 sm:$0xff]  ;;  %s3889_s26 = scalar_lea.vmem (%p920_p8), %s3821_s12, %s3266_s23 }
 0x126   : >> { %v1044_v54 = vmul.f32 0.35355338, %v1034_v45  ;;  %v1040_v55 = vmul.f32 0.35355338, %v1018_v48  ;;  %s3890_s23 = sld [smem:[#allocation3_spill]] (%p920_p8) }
 0x127   : >> { %v1042_v57 = vmul.f32 0.35355338, %v1026_v50  ;;  %v1038_v58 = vmul.f32 0.35355338, %v1010_v52 }
 0x128   : >> { %v1230_v59 = vpack.c.bf16 %v1044_v54, %v1043_v53  ;;  %v1228_v60 = vpack.c.bf16 %v1040_v55, %v1039_v47 }
 0x129   : >> { %v1229_v61 = vpack.c.bf16 %v1042_v57, %v1041_v56  ;;  %v2717_v62 = vpop.f32.mrb[4].mxu1  ;;  %v1227_v0 = vpack.c.bf16 %v1038_v58, %v1037_v51 }
 0x12a   : >> { %v1105_v1 = vpop.f32.mrb[5].mxu1  ;;  %v1114_v3 = vadd.f32 %v2717_v62, %v2569_v63 }
 0x12b   : >> { %v2718_v2 = vpop.f32.mrb[6].mxu1  ;;  %2743 = vmatprep.mubr.msk.bf16.mxu1 %vm1235_vm2, %v1227_v0  ;;  %v1106_v6 = vadd.f32 %v2569_v63, %v1105_v1 }
 0x12c   : >> { %v1117_v4 = vadd.f32 %v2718_v2, %v2569_v63  ;;  %v1108_v5 = vpop.f32.mrb[7].mxu1  ;;  %v2729_v45 = vpop.f32.mrb[4].mxu0  ;;  %p2618_p9 = scmp.ge.s32.totalorder (%p920_p8), %s3890_s23, 1 }
 0x12d   : >> { %v1109_v7 = vadd.f32 %v2569_v63, %v1108_v5  ;;  %v1205_v46 = vadd.f32 %v2729_v45, %v2577_v44  ;;  %v1196_v47 = vpop.f32.mrb[5].mxu0 }
 0x12e   : >> { %v1232_v28 = vpack.c.bf16 %v1117_v4, %v1114_v3  ;;  %v1197_v48 = vadd.f32 %v2577_v44, %v1196_v47  ;;  %v2730_v49 = vpop.f32.mrb[6].mxu0 }
 0x12f   : >> { %v1231_v29 = vpack.c.bf16 %v1109_v7, %v1106_v6  ;;  %v1208_v50 = vadd.f32 %v2730_v49, %v2577_v44  ;;  %v1199_v51 = vpop.f32.mrb[7].mxu0 }
 0x130   : >> { %v1252_v41 = vsel %vm1235_vm2, %v1232_v28, 0  ;;  %v1200_v52 = vadd.f32 %v2577_v44, %v1199_v51 }
 0x131   : >> { %2825 = vmatprep.subr.msk.bf16.mxu1 %vm1235_vm2, %v1231_v29  ;;  %v1249_v30 = vsel %vm1235_vm2, %v1231_v29, 0  ;;  %v2721_v31 = vpop.f32.mrb[8].mxu1  ;;  %v1403_v53 = vpack.c.bf16 %v1208_v50, %v1205_v46 }
 0x132   : >> { %2736 = vmatpush3.bf16.xpose.msra.mxu1 %v1249_v30  ;;  %v1130_v32 = vadd.f32 %v2721_v31, %v2569_v63  ;;  %v1121_v33 = vpop.f32.mrb[9].mxu1  ;;  %v1402_v54 = vpack.c.bf16 %v1200_v52, %v1197_v48 }
 0x133   : >> { %2826 = vmatprep.subr.msk.bf16.mxu1 %vm1235_vm2, %v1232_v28  ;;  %v1122_v34 = vadd.f32 %v2569_v63, %v1121_v33  ;;  %v2722_v35 = vpop.f32.mrb[10].mxu1 }
 0x134   : >> { %v1133_v36 = vadd.f32 %v2722_v35, %v2569_v63  ;;  %v1124_v37 = vpop.f32.mrb[11].mxu1  ;;  %2751 = vmatprep.subr.bf16.mxu0 %v1402_v54  ;;  %v2733_v7 = vpop.f32.mrb[8].mxu0 }
 0x135   : >> { %v1125_v38 = vadd.f32 %v2569_v63, %v1124_v37  ;;  %2752 = vmatpush3.bf16.msra.mxu0 %v1402_v54  ;;  %v1212_v28 = vpop.f32.mrb[9].mxu0  ;;  %v1221_v31 = vadd.f32 %v2733_v7, %v2577_v44 }
 0x136   : >> { %v1234_v39 = vpack.c.bf16 %v1133_v36, %v1130_v32  ;;  %2753 = vmatprep.subr.bf16.mxu0 %v1403_v53  ;;  %v2734_v29 = vpop.f32.mrb[10].mxu0  ;;  %v1213_v32 = vadd.f32 %v2577_v44, %v1212_v28 }
 0x137   : >> { %v1233_v40 = vpack.c.bf16 %v1125_v38, %v1122_v34  ;;  %v1215_v30 = vpop.f32.mrb[11].mxu0  ;;  %v1224_v34 = vadd.f32 %v2734_v29, %v2577_v44 }
 0x138   : >> { %v1258_v43 = vsel %vm1235_vm2, %v1234_v39, 0  ;;  %v1216_v33 = vadd.f32 %v2577_v44, %v1215_v30 }
 0x139   : >> { %v1255_v42 = vsel %vm1235_vm2, %v1233_v40, 0  ;;  %2754 = vmatpush3.bf16.msra.mxu0 %v1403_v53  ;;  %v1405_v36 = vpack.c.bf16 %v1224_v34, %v1221_v31 }
 0x13a   : >> { %2738 = vmatpush3.bf16.xpose.msra.mxu1 %v1252_v41  ;;  %v1404_v35 = vpack.c.bf16 %v1216_v33, %v1213_v32 }
 0x13b   : >> { %2827 = vmatprep.subr.msk.bf16.mxu1 %vm1235_vm2, %v1233_v40 }
 0x13c   : >> { %2755 = vmatprep.subr.bf16.mxu0 %v1404_v35 }
 0x13d   : >> { %2756 = vmatpush3.bf16.msra.mxu0 %v1404_v35 }
 0x13e   : >> { %2757 = vmatprep.subr.bf16.mxu0 %v1405_v36 }
 0x141   : >> { %2758 = vmatpush3.bf16.msra.mxu0 %v1405_v36 }
 0x142   : >> { %2740 = vmatpush3.bf16.xpose.msra.mxu1 %v1255_v42 }
 0x143   : >> { %2828 = vmatprep.subr.msk.bf16.mxu1 %vm1235_vm2, %v1234_v39 }
 0x14a   : >> { %2742 = vmatpush3.bf16.xpose.msra.mxu1 %v1258_v43 }
 0x151   : >> { %2744 = vmatmul.mubr.msk.bf16.vlgmr.msra.gmra.mrb[12].mxu1 %vm1235_vm2, %v1228_v60 }
 0x152   : >> { %2747 = vmatprep.mubr.msk.bf16.mxu1 %vm1235_vm2, %v1229_v61 }
 0x159   : >> { %2748 = vmatmul.mubr.msk.bf16.gmra.mrb[16].mxu1 %vm1235_vm2, %v1230_v59 }
 0x224   : >> { %v2745_v55 = vpop.f32.mrb[12].mxu1 }
 0x225   : >> { %v1294_v56 = vpop.f32.mrb[13].mxu1  ;;  %v1332_v57 = vsel %vm1325_vm3, %v2745_v55, -inf }
 0x226   : >> { %1333 = vmax.xlane.f32.xlu1 %v1332_v57  ;;  %v2746_v58 = vpop.f32.mrb[14].mxu1  ;;  %v1326_v59 = vsel %vm1325_vm3, %v1294_v56, -inf }
 0x227   : >> { %1327 = vmax.xlane.f32.xlu0 %v1326_v59  ;;  %v1297_v60 = vpop.f32.mrb[15].mxu1  ;;  %v1335_v61 = vsel %vm1325_vm3, %v2746_v58, -inf }
 0x228   : >> { %v1329_v62 = vsel %vm1325_vm3, %v1297_v60, -inf }
 0x22a   : >> { %1336 = vmax.xlane.f32.xlu1 %v1335_v61 }
 0x22b   : >> { %1330 = vmax.xlane.f32.xlu0 %v1329_v62 }
 0x22c   : >> { %v2749_v63 = vpop.f32.mrb[16].mxu1 }
 0x22d   : >> { %v1310_v0 = vpop.f32.mrb[17].mxu1  ;;  %v1344_v5 = vsel %vm1325_vm3, %v2749_v63, -inf }
 0x22e   : >> { %v2750_v1 = vpop.f32.mrb[18].mxu1  ;;  %v1338_v2 = vsel %vm1325_vm3, %v1310_v0, -inf }
 0x22f   : >> { %1339 = vmax.xlane.f32.xlu0 %v1338_v2  ;;  %v1313_v3 = vpop.f32.mrb[19].mxu1  ;;  %v1347_v6 = vsel %vm1325_vm3, %v2750_v1, -inf }
 0x230   : >> { %v1341_v4 = vsel %vm1325_vm3, %v1313_v3, -inf }
 0x231   : >> { %1342 = vmax.xlane.f32.xlu1 %v1341_v4 }
 0x233   : >> { %1345 = vmax.xlane.f32.xlu0 %v1344_v5 }
 0x235   : >> { %1348 = vmax.xlane.f32.xlu1 %v1347_v6 }
 0x2b3   : >> { %v1334_v37 = vpop.xlane.xlu1 %1333 }
 0x2b4   : >> { %v1352_v38 = vsub.f32 %v2745_v55, %v1334_v37  ;;  %v1328_v39 = vpop.xlane.xlu0 %1327  ;;  %v1505_v37 = vld [vmem:[%s1504_s24] sm:$0xf] }
 0x2b5   : >> { %v1350_v40 = vsub.f32 %v1294_v56, %v1328_v39  ;;  %2829 = vmatprep.subr.msk.bf16.mxu0 %vm1518_vm4, %v1505_v37 }
 0x2b6   : >> { %v1362_v41 = vmul.f32 1.442695, %v1352_v38  ;;  %v1520_v38 = vsel %vm1518_vm4, %v1505_v37, 0 }
 0x2b7   : >> { %v1358_v42 = vmul.f32 1.442695, %v1350_v40  ;;  %v1337_v43 = vpop.xlane.xlu1 %1336 }
 0x2b8   : >> { %v1353_v45 = vsub.f32 %v2746_v58, %v1337_v43  ;;  %v1331_v46 = vpop.xlane.xlu0 %1330 }
 0x2b9   : >> { %2948 = vpow2.f32 %v1358_v42  ;;  %v1351_v47 = vsub.f32 %v1297_v60, %v1331_v46 }
 0x2ba   : >> { %v1364_v48 = vmul.f32 1.442695, %v1353_v45  ;;  %2950 = vpow2.f32 %v1362_v41 }
 0x2bb   : >> { %v1360_v44 = vmul.f32 1.442695, %v1351_v47 }
 0x2bc   : >> { %2952 = vpow2.f32 %v1364_v48  ;;  %v1340_v49 = vpop.xlane.xlu0 %1339 }
 0x2bd   : >> { %2954 = vpow2.f32 %v1360_v44  ;;  %v1354_v50 = vsub.f32 %v1310_v0, %v1340_v49 }
 0x2be   : >> { %v1343_v51 = vpop.xlane.xlu1 %1342 }
 0x2bf   : >> { %v1366_v52 = vmul.f32 1.442695, %v1354_v50  ;;  %v1355_v53 = vsub.f32 %v1313_v3, %v1343_v51 }
 0x2c0   : >> { %v1346_v54 = vpop.xlane.xlu0 %1345 }
 0x2c1   : >> { %2956 = vpow2.f32 %v1366_v52  ;;  %v1368_v55 = vmul.f32 1.442695, %v1355_v53  ;;  %v1356_v56 = vsub.f32 %v2749_v63, %v1346_v54 }
 0x2c2   : >> { %v1349_v57 = vpop.xlane.xlu1 %1348 }
 0x2c3   : >> { %v2949_v59 = vpop.eup %2948  ;;  %2958 = vpow2.f32 %v1368_v55  ;;  %v1370_v58 = vmul.f32 1.442695, %v1356_v56  ;;  %v1357_v61 = vsub.f32 %v2750_v1, %v1349_v57 }
 0x2c4   : >> { %v1374_v60 = vsel %vm1325_vm3, %v2949_v59, 0.0  ;;  %v2951_v62 = vpop.eup %2950 }
 0x2c5   : >> { %2960 = vpow2.f32 %v1370_v58  ;;  %v1372_v2 = vmul.f32 1.442695, %v1357_v61  ;;  %1375 = vadd.xlane.f32.xlu0 %v1374_v60  ;;  %v1380_v3 = vsel %vm1325_vm3, %v2951_v62, 0.0 }
 0x2c6   : >> { %v2953_v4 = vpop.eup %2952 }
 0x2c7   : >> { %v2955_v0 = vpop.eup %2954  ;;  %v1399_v5 = vpack.c.bf16 %v2953_v4, %v2951_v62  ;;  %2962 = vpow2.f32 %v1372_v2  ;;  %v1383_v28 = vsel %vm1325_vm3, %v2953_v4, 0.0 }
 0x2c8   : >> { %v1377_v6 = vsel %vm1325_vm3, %v2955_v0, 0.0  ;;  %v1398_v63 = vpack.c.bf16 %v2955_v0, %v2949_v59 }
 0x2c9   : >> { %1381 = vadd.xlane.f32.xlu0 %v1380_v3  ;;  %1378 = vadd.xlane.f32.xlu1 %v1377_v6 }
 0x2ca   : >> { %2759 = vmatprep.mubr.msk.bf16.mxu0 %vm1325_vm3, %v1398_v63 }
 0x2cb   : >> { %v2957_v1 = vpop.eup %2956  ;;  %2760 = vmatmul.mubr.msk.bf16.vlgmr.msra.gmra.mrb[12].mxu0 %vm1325_vm3, %v1399_v5 }
 0x2cc   : >> { %v1386_v7 = vsel %vm1325_vm3, %v2957_v1, 0.0  ;;  %2768 = vmatpush3.bf16.msra.mxu0 %v1520_v38 }
 0x2cd   : >> { %v2959_v29 = vpop.eup %2958  ;;  %1387 = vadd.xlane.f32.xlu0 %v1386_v7  ;;  %1384 = vadd.xlane.f32.xlu1 %v1383_v28 }
 0x2ce   : >> { %v1400_v30 = vpack.c.bf16 %v2959_v29, %v2957_v1  ;;  %v1389_v33 = vsel %vm1325_vm3, %v2959_v29, 0.0 }
 0x2cf   : >> { %v2961_v31 = vpop.eup %2960 }
 0x2d0   : >> { %2763 = vmatprep.mubr.msk.bf16.mxu0 %vm1325_vm3, %v1400_v30  ;;  %v1392_v32 = vsel %vm1325_vm3, %v2961_v31, 0.0 }
 0x2d1   : >> { %v2963_v34 = vpop.eup %2962  ;;  %1393 = vadd.xlane.f32.xlu0 %v1392_v32  ;;  %1390 = vadd.xlane.f32.xlu1 %v1389_v33 }
 0x2d2   : >> { %v1401_v35 = vpack.c.bf16 %v2963_v34, %v2961_v31  ;;  %v1395_v36 = vsel %vm1325_vm3, %v2963_v34, 0.0 }
 0x2d4   : >> { %2764 = vmatmul.mubr.msk.bf16.gmra.mrb[16].mxu0 %vm1325_vm3, %v1401_v35 }
 0x2d5   : >> { %1396 = vadd.xlane.f32.xlu1 %v1395_v36 }
 0x352   : >> { %v1376_v39 = vpop.xlane.xlu0 %1375 }
 0x353   : >> { %2964 = vrcp.f32 %v1376_v39 }
 0x356   : >> { %v1379_v40 = vpop.xlane.xlu1 %1378  ;;  %v1382_v41 = vpop.xlane.xlu0 %1381 }
 0x357   : >> { %2966 = vrcp.f32 %v1382_v41 }
 0x35a   : >> { %v1385_v42 = vpop.xlane.xlu1 %1384  ;;  %v1388_v43 = vpop.xlane.xlu0 %1387 }
 0x35b   : >> { %2968 = vrcp.f32 %v1385_v42 }
 0x35c   : >> { %2970 = vrcp.f32 %v1379_v40 }
 0x35d   : >> { %2972 = vrcp.f32 %v1388_v43  ;;  %v2965_v48 = vpop.eup %2964 }
 0x35e   : >> { %v1391_v45 = vpop.xlane.xlu1 %1390  ;;  %v1394_v46 = vpop.xlane.xlu0 %1393 }
 0x35f   : >> { %2974 = vrcp.f32 %v1394_v46 }
 0x361   : >> { %v2967_v49 = vpop.eup %2966 }
 0x362   : >> { %v1397_v47 = vpop.xlane.xlu1 %1396 }
 0x363   : >> { %2976 = vrcp.f32 %v1397_v47 }
 0x364   : >> { %2978 = vrcp.f32 %v1391_v45 }
 0x365   : >> { %v2969_v51 = vpop.eup %2968 }
 0x366   : >> { %v2971_v53 = vpop.eup %2970 }
 0x367   : >> { %v2973_v60 = vpop.eup %2972 }
 0x369   : >> { %v2975_v2 = vpop.eup %2974 }
 0x36d   : >> { %v2977_v0 = vpop.eup %2976 }
 0x36e   : >> { %v2979_v3 = vpop.eup %2978 }
 0x39e   : >> { %v2761_v44 = vpop.f32.mrb[12].mxu0 }
 0x39f   : >> { %v1452_v50 = vpop.f32.mrb[13].mxu0  ;;  %v1493_v54 = vmul.f32 %v2967_v49, %v2761_v44 }
 0x3a0   : >> { %v2762_v52 = vpop.f32.mrb[14].mxu0  ;;  %v1491_v57 = vmul.f32 %v2965_v48, %v1452_v50 }
 0x3a1   : >> { %v1494_v55 = vmul.f32 %v2969_v51, %v2762_v52  ;;  %v1455_v56 = vpop.f32.mrb[15].mxu0 }
 0x3a2   : >> { %v1492_v59 = vmul.f32 %v2971_v53, %v1455_v56 }
 0x3a3   : >> { %v1500_v58 = vpack.c.bf16 %v1494_v55, %v1493_v54 }
 0x3a4   : >> { %v1499_v61 = vpack.c.bf16 %v1492_v59, %v1491_v57 }
 0x3a6   : >> { %2769 = vmatprep.mubr.msk.bf16.mxu0 %vm1235_vm2, %v1499_v61 }
 0x3a7   : >> { %v2765_v62 = vpop.f32.mrb[16].mxu0  ;;  %2770 = vmatmul.mubr.msk.bf16.vlgmr.msra.gmra.mrb[20].mxu0 %vm1235_vm2, %v1500_v58 }
 0x3a8   : >> { %v1468_v4 = vpop.f32.mrb[17].mxu0  ;;  %v1497_v6 = vmul.f32 %v2975_v2, %v2765_v62 }
 0x3a9   : >> { %v2766_v5 = vpop.f32.mrb[18].mxu0  ;;  %v1495_v7 = vmul.f32 %v2973_v60, %v1468_v4 }
 0x3aa   : >> { %v1498_v63 = vmul.f32 %v2977_v0, %v2766_v5  ;;  %v1471_v1 = vpop.f32.mrb[19].mxu0 }
 0x3ab   : >> { %v1496_v28 = vmul.f32 %v2979_v3, %v1471_v1 }
 0x3ac   : >> { %v1502_v29 = vpack.c.bf16 %v1498_v63, %v1497_v6 }
 0x3ad   : >> { %v1501_v30 = vpack.c.bf16 %v1496_v28, %v1495_v7 }
 0x3af   : >> { %2773 = vmatprep.mubr.msk.bf16.mxu0 %vm1235_vm2, %v1501_v30 }
 0x3b0   : >> { %2774 = vmatmul.mubr.msk.bf16.gmra.mrb[24].mxu0 %vm1235_vm2, %v1502_v29 }
 0x47a   : >> { %v2771_v31 = vpop.f32.mrb[20].mxu0 }
 0x47b   : >> { %v1589_v32 = vadd.f32 %v3118_v25, %v2771_v31   ;;  %v1556_v33 = vpop.f32.mrb[21].mxu0 }
 0x47c   : >> { %v1587_v34 = vadd.f32 %v3126_v27, %v1556_v33   ;;  %v2772_v35 = vpop.f32.mrb[22].mxu0 }
 0x47d   : >> { %v1590_v36 = vadd.f32 %v3114_v24, %v2772_v35   ;;  %v1559_v37 = vpop.f32.mrb[23].mxu0  ;;  %v3883_v25 = vmov %v1589_v32 }
 0x47e   : >> { %v1588_v38 = vadd.f32 %v3122_v26, %v1559_v37   ;;  %v3885_v27 = vmov %v1587_v34 }
 0x47f   : >> { %v3882_v24 = vmov %v1590_v36  ;;  %v2597_v27 = vld [vmem:[%s3886_s0] ss:$0 sm:$0xff] (%p920_p8) }
 0x480   : >> { %v3884_v26 = vmov %v1588_v38  ;;  %v1602_v48 = vadd.f32 (%p920_p8), %v2597_v27, %v1587_v34  ;;  %v1604_v44 = vadd.f32 (%p920_p8), %v2597_v27, %v1589_v32  ;;  %v1603_v49 = vadd.f32 (%p920_p8), %v2597_v27, %v1588_v38 }
 0x481   : > { %v1605_v50 = vadd.f32 (%p920_p8), %v2597_v27, %v1590_v36 }
 0x482   : > { %v1610_v53 = vadd.f32 (%p920_p8), %v1602_v48, %v3362_v8  ;;  %v1612_v54 = vadd.f32 (%p920_p8), %v1604_v44, %v3366_v10  ;;  %v1611_v55 = vadd.f32 (%p920_p8), %v1603_v49, %v3364_v9  ;;  %v2980_v48 = vld [vmem:[%s3324_s17] sm:$0xff] (%p920_p8)   ;;  %v2981_v44 = vld [vmem:[%s3324_s17 + $0x8] sm:$0xff] (%p920_p8)  }
 0x483   : >> { %v2775_v39 = vpop.f32.mrb[24].mxu0  ;;  %922 = sbr.rel (!%p920_p8) target bundleno = 60 (0x3c), region = 200  ;;  %v1613_v56 = vadd.f32 (%p920_p8), %v1605_v50, %v3368_v11  ;;  %2777 = vmatprep.subr.bf16.mxu0 (%p920_p8), %v2980_v48  ;;  %v2982_v49 = vld [vmem:[%s3338_s4] sm:$0xff] (%p920_p8)   ;;  %v2983_v50 = vld [vmem:[%s3338_s4 + $0x8] sm:$0xff] (%p920_p8)  }
 0x484   : >> { %v1593_v40 = vadd.f32 %v3102_v21, %v2775_v39   ;;  %v1572_v41 = vpop.f32.mrb[25].mxu0  ;;  %v1621_v14 = vsel (%p920_p8), %vm959_vm1, %v1610_v53, 0.0  ;;  %v1627_v17 = vsel (%p920_p8), %vm959_vm1, %v1612_v54, 0.0  ;;  %2778 = vmatpush3.bf16.msra.mxu0 (%p920_p8), %v2980_v48  ;;  %2789 = vmatprep.subr.bf16.mxu1 (%p920_p8), %v2982_v49 }
 0x485   : >> { %v1591_v42 = vadd.f32 %v3110_v23, %v1572_v41   ;;  %v2776_v43 = vpop.f32.mrb[26].mxu0  ;;  %1622 = vadd.xlane.f32.xlu0 (%p920_p8), %v1621_v14  ;;  %1628 = vadd.xlane.f32.xlu1 (%p920_p8), %v1627_v17 }
 0x486   : >> { %v1594_v45 = vadd.f32 %v3098_v20, %v2776_v43   ;;  %v1575_v46 = vpop.f32.mrb[27].mxu0  ;;  %v3879_v21 = vmov %v1593_v40  ;;  %v1608_v18 = vadd.f32 (%p920_p8), %v2597_v27, %v1593_v40  ;;  %2779 = vmatprep.subr.bf16.mxu0 (%p920_p8), %v2981_v44  ;;  %2790 = vmatpush3.bf16.msra.mxu1 (%p920_p8), %v2982_v49 }
 0x487   : >> { %v1592_v47 = vadd.f32 %v3106_v22, %v1575_v46   ;;  %v3881_v23 = vmov %v1591_v42  ;;  %v1606_v51 = vadd.f32 (%p920_p8), %v2597_v27, %v1591_v42  ;;  %v1630_v21 = vsel (%p920_p8), %vm959_vm1, %v1613_v56, 0.0  ;;  %2791 = vmatprep.subr.bf16.mxu1 (%p920_p8), %v2983_v50 }
 0x488   : >> { %v3878_v20 = vmov %v1594_v45  ;;  %v1609_v19 = vadd.f32 (%p920_p8), %v2597_v27, %v1594_v45  ;;  %2780 = vmatpush3.bf16.msra.mxu0 (%p920_p8), %v2981_v44 }
 0x489   : >> { %v3880_v22 = vmov %v1592_v47  ;;  %v1607_v52 = vadd.f32 (%p920_p8), %v2597_v27, %v1592_v47  ;;  %v1624_v20 = vsel (%p920_p8), %vm959_vm1, %v1611_v55, 0.0  ;;  %v1614_v8 = vadd.f32 (%p920_p8), %v1606_v51, %v3370_v12  ;;  %1631 = vadd.xlane.f32.xlu1 (%p920_p8), %v1630_v21 }
 0x48a   : > { %1625 = vadd.xlane.f32.xlu0 %v1624_v20  ;;  %v1616_v22 = vadd.f32 %v1608_v18, %v3378_v15  ;;  %v1617_v23 = vadd.f32 %v1609_v19, %v3380_v16  ;;  %2792 = vmatpush3.bf16.msra.mxu1 %v2983_v50  ;;  %v2984_v50 = vld [vmem:[%s3338_s4 + $0x10] sm:$0xff]  }
 0x48b   : > { %v1615_v10 = vadd.f32 %v1607_v52, %v3372_v13  ;;  %v1633_v9 = vsel %vm959_vm1, %v1614_v8, 0.0  ;;  %2793 = vmatprep.subr.bf16.mxu1 %v2984_v50 }
 0x48c   : > { %v1639_v24 = vsel %vm959_vm1, %v1616_v22, 0.0  ;;  %v1642_v25 = vsel %vm959_vm1, %v1617_v23, 0.0 }
 0x48d   : > { %v1636_v11 = vsel %vm959_vm1, %v1615_v10, 0.0 }
 0x48e   : > { %1634 = vadd.xlane.f32.xlu0 %v1633_v9  ;;  %1637 = vadd.xlane.f32.xlu1 %v1636_v11 }
 0x48f   : > { %2794 = vmatpush3.bf16.msra.mxu1 %v2984_v50 }
 0x492   : > { %1640 = vadd.xlane.f32.xlu0 %v1639_v24  ;;  %1643 = vadd.xlane.f32.xlu1 %v1642_v25 }
 0x512   : > { %v1623_v12 = vpop.xlane.xlu0 %1622  ;;  %v1629_v13 = vpop.xlane.xlu1 %1628 }
 0x513   : > { %v1646_v26 = vmul.f32 0.03125, %v1623_v12  ;;  %v1648_v57 = vmul.f32 0.03125, %v1629_v13 }
 0x515   : > { %v3583_v59 = vsub.f32 %v1610_v53, %v1646_v26  ;;  %v3585_v58 = vsub.f32 %v1612_v54, %v1648_v57 }
 0x516   : > { %v1632_v15 = vpop.xlane.xlu1 %1631 }
 0x517   : > { %v1626_v61 = vpop.xlane.xlu0 %1625  ;;  %v1649_v16 = vmul.f32 0.03125, %v1632_v15  ;;  %v1662_v62 = vmul.f32 %v3583_v59, %v3583_v59  ;;  %v1664_v2 = vmul.f32 %v3585_v58, %v3585_v58  ;;  %v2598_v15 = vld [vmem:[%s3887_s7] ss:$0 sm:$0xff] }
 0x518   : > { %v1647_v60 = vmul.f32 0.03125, %v1626_v61 }
 0x519   : > { %v3593_v0 = vsub.f32 %v1613_v56, %v1649_v16  ;;  %v1670_v5 = vsel %vm959_vm1, %v1662_v62, 0.0  ;;  %v1676_v63 = vsel %vm959_vm1, %v1664_v2, 0.0 }
 0x51a   : > { %v3591_v4 = vsub.f32 %v1611_v55, %v1647_v60  ;;  %1671 = vadd.xlane.f32.xlu0 %v1670_v5 }
 0x51b   : > { %v1635_v3 = vpop.xlane.xlu0 %1634  ;;  %v1638_v6 = vpop.xlane.xlu1 %1637  ;;  %v1665_v29 = vmul.f32 %v3593_v0, %v3593_v0 }
 0x51c   : > { %v1650_v1 = vmul.f32 0.03125, %v1635_v3  ;;  %v1651_v7 = vmul.f32 0.03125, %v1638_v6  ;;  %v1663_v28 = vmul.f32 %v3591_v4, %v3591_v4 }
 0x51d   : > { %v1679_v35 = vsel %vm959_vm1, %v1665_v29, 0.0 }
 0x51e   : > { %v3601_v30 = vsub.f32 %v1614_v8, %v1650_v1  ;;  %v3603_v31 = vsub.f32 %v1615_v10, %v1651_v7  ;;  %v1673_v32 = vsel %vm959_vm1, %v1663_v28, 0.0  ;;  %1677 = vadd.xlane.f32.xlu0 %v1676_v63 }
 0x51f   : > { %1674 = vadd.xlane.f32.xlu1 %v1673_v32  ;;  %v1641_v33 = vpop.xlane.xlu0 %1640  ;;  %v1644_v34 = vpop.xlane.xlu1 %1643 }
 0x520   : > { %v1652_v36 = vmul.f32 0.03125, %v1641_v33  ;;  %v1653_v37 = vmul.f32 0.03125, %v1644_v34  ;;  %v1666_v38 = vmul.f32 %v3601_v30, %v3601_v30  ;;  %v1667_v39 = vmul.f32 %v3603_v31, %v3603_v31 }
 0x522   : > { %v3611_v40 = vsub.f32 %v1616_v22, %v1652_v36  ;;  %v3613_v41 = vsub.f32 %v1617_v23, %v1653_v37  ;;  %v1682_v42 = vsel %vm959_vm1, %v1666_v38, 0.0  ;;  %v1685_v43 = vsel %vm959_vm1, %v1667_v39, 0.0 }
 0x523   : > { %1680 = vadd.xlane.f32.xlu1 %v1679_v35  ;;  %1683 = vadd.xlane.f32.xlu0 %v1682_v42 }
 0x524   : > { %v1668_v45 = vmul.f32 %v3611_v40, %v3611_v40  ;;  %v1669_v46 = vmul.f32 %v3613_v41, %v3613_v41 }
 0x526   : > { %v1688_v47 = vsel %vm959_vm1, %v1668_v45, 0.0  ;;  %v1691_v27 = vsel %vm959_vm1, %v1669_v46, 0.0 }
 0x527   : > { %1686 = vadd.xlane.f32.xlu1 %v1685_v43  ;;  %1689 = vadd.xlane.f32.xlu0 %v1688_v47 }
 0x52b   : > { %1692 = vadd.xlane.f32.xlu1 %v1691_v27 }
 0x5a7   : > { %v1672_v51 = vpop.xlane.xlu0 %1671 }
 0x5a8   : > { %v1694_v52 = vmul.f32 0.03125, %v1672_v51  ;;  %v2600_v51 = vld [vmem:[%s3889_s26] ss:$0 sm:$0xff] }
 0x5aa   : > { %v1702_v53 = vadd.f32 1e-05, %v1694_v52 }
 0x5ab   : > { %v1678_v55 = vpop.xlane.xlu0 %1677 }
 0x5ac   : > { %v1675_v54 = vpop.xlane.xlu1 %1674  ;;  %2986 = vrsqrt.f32 %v1702_v53  ;;  %v1696_v14 = vmul.f32 0.03125, %v1678_v55 }
 0x5ad   : > { %v1695_v56 = vmul.f32 0.03125, %v1675_v54 }
 0x5ae   : > { %v1704_v18 = vadd.f32 1e-05, %v1696_v14 }
 0x5af   : > { %v1703_v17 = vadd.f32 1e-05, %v1695_v56 }
 0x5b0   : > { %v1681_v19 = vpop.xlane.xlu1 %1680  ;;  %v1684_v20 = vpop.xlane.xlu0 %1683 }
 0x5b1   : > { %2988 = vrsqrt.f32 %v1703_v17  ;;  %v1697_v21 = vmul.f32 0.03125, %v1681_v19  ;;  %v1698_v8 = vmul.f32 0.03125, %v1684_v20 }
 0x5b2   : > { %2990 = vrsqrt.f32 %v1704_v18 }
 0x5b3   : > { %v1705_v10 = vadd.f32 1e-05, %v1697_v21  ;;  %v1706_v9 = vadd.f32 1e-05, %v1698_v8 }
 0x5b4   : > { %v1687_v11 = vpop.xlane.xlu1 %1686  ;;  %v1690_v22 = vpop.xlane.xlu0 %1689 }
 0x5b5   : > { %2992 = vrsqrt.f32 %v1705_v10  ;;  %v1699_v23 = vmul.f32 0.03125, %v1687_v11  ;;  %v1700_v24 = vmul.f32 0.03125, %v1690_v22 }
 0x5b6   : > { %2994 = vrsqrt.f32 %v1706_v9  ;;  %v2987_v25 = vpop.eup %2986 }
 0x5b7   : > { %v1707_v12 = vadd.f32 1e-05, %v1699_v23  ;;  %v1708_v13 = vadd.f32 1e-05, %v1700_v24  ;;  %v1718_v57 = vmul.f32 %v2987_v25, %v3583_v59  ;;  %v2599_v59 = vld [vmem:[%s3888_s29] ss:$0 sm:$0xff] }
 0x5b8   : > { %v1693_v26 = vpop.xlane.xlu1 %1692 }
 0x5b9   : > { %2996 = vrsqrt.f32 %v1707_v12  ;;  %v1701_v61 = vmul.f32 0.03125, %v1693_v26  ;;  %v1732_v5 = vmul.f32 %v2598_v15, %v1718_v57 }
 0x5ba   : > { %2998 = vrsqrt.f32 %v1708_v13 }
 0x5bb   : > { %v2989_v60 = vpop.eup %2988  ;;  %v1709_v16 = vadd.f32 1e-05, %v1701_v61  ;;  %v3640_v7 = vadd.f32 %v2599_v59, %v1732_v5 }
 0x5bc   : > { %v2991_v62 = vpop.eup %2990  ;;  %v1719_v2 = vmul.f32 %v2989_v60, %v3591_v4 }
 0x5bd   : > { %3000 = vrsqrt.f32 %v1709_v16  ;;  %v1720_v3 = vmul.f32 %v2991_v62, %v3585_v58 }
 0x5be   : > { %v1733_v6 = vmul.f32 %v2598_v15, %v1719_v2  ;;  %v2607_v2 = vld [vmem:[%s872_s19] ss:$0 sm:$0xff] }
 0x5bf   : > { %v2993_v63 = vpop.eup %2992  ;;  %v1734_v32 = vmul.f32 %v2598_v15, %v1720_v3 }
 0x5c0   : > { %v2995_v1 = vpop.eup %2994  ;;  %v3642_v28 = vadd.f32 %v2599_v59, %v1733_v6  ;;  %v1721_v29 = vmul.f32 %v2993_v63, %v3593_v0 }
 0x5c1   : > { %v1722_v4 = vmul.f32 %v2995_v1, %v3601_v30  ;;  %v3649_v58 = vadd.f32 %v2599_v59, %v1734_v32 }
 0x5c2   : > { %v1754_v33 = vpack.c.bf16 %v3642_v28, %v3640_v7  ;;  %v1735_v34 = vmul.f32 %v2598_v15, %v1721_v29 }
 0x5c3   : > { %v2997_v35 = vpop.eup %2996  ;;  %v1736_v39 = vmul.f32 %v2598_v15, %v1722_v4 }
 0x5c4   : > { %v2999_v36 = vpop.eup %2998  ;;  %2781 = vmatprep.mubr.msk.bf16.mxu0 %vm959_vm1, %v1754_v33  ;;  %v3651_v37 = vadd.f32 %v2599_v59, %v1735_v34  ;;  %v1723_v38 = vmul.f32 %v2997_v35, %v3603_v31 }
 0x5c5   : > { %v1724_v0 = vmul.f32 %v2999_v36, %v3611_v40  ;;  %v3658_v45 = vadd.f32 %v2599_v59, %v1736_v39 }
 0x5c6   : > { %v1755_v30 = vpack.c.bf16 %v3651_v37, %v3649_v58  ;;  %v1737_v42 = vmul.f32 %v2598_v15, %v1723_v38 }
 0x5c7   : > { %v3001_v43 = vpop.eup %3000  ;;  %v1738_v31 = vmul.f32 %v2598_v15, %v1724_v0 }
 0x5c8   : > { %2782 = vmatmul.mubr.msk.bf16.vlgmr.msra.gmra.mrb[0].mxu0 %vm959_vm1, %v1755_v30  ;;  %v3660_v46 = vadd.f32 %v2599_v59, %v1737_v42  ;;  %v1725_v47 = vmul.f32 %v3001_v43, %v3613_v41  ;;  %v2985_v41 = vld [vmem:[%s3338_s4 + $0x18] sm:$0xff]  }
 0x5c9   : > { %v3666_v48 = vadd.f32 %v2599_v59, %v1738_v31  ;;  %2795 = vmatprep.subr.bf16.mxu1 %v2985_v41 }
 0x5ca   : > { %v1756_v40 = vpack.c.bf16 %v3660_v46, %v3658_v45  ;;  %v1739_v27 = vmul.f32 %v2598_v15, %v1725_v47  ;;  %2796 = vmatpush3.bf16.msra.mxu1 %v2985_v41 }
 0x5cc   : > { %2785 = vmatprep.mubr.msk.bf16.mxu0 %vm959_vm1, %v1756_v40  ;;  %v3668_v44 = vadd.f32 %v2599_v59, %v1739_v27 }
 0x5ce   : > { %v1757_v49 = vpack.c.bf16 %v3668_v44, %v3666_v48 }
 0x5d0   : > { %2786 = vmatmul.mubr.msk.bf16.gmra.mrb[4].mxu0 %vm959_vm1, %v1757_v49 }
 0x69b   : > { %v2783_v52 = vpop.f32.mrb[0].mxu0 }
 0x69c   : > { %v1836_v53 = vadd.f32 %v2783_v52, %v2600_v51  ;;  %v1827_v54 = vpop.f32.mrb[1].mxu0 }
 0x69d   : > { %v1828_v55 = vadd.f32 %v2600_v51, %v1827_v54  ;;  %v2784_v56 = vpop.f32.mrb[2].mxu0 }
 0x69e   : > { %v1839_v14 = vadd.f32 %v2784_v56, %v2600_v51  ;;  %v1830_v17 = vpop.f32.mrb[3].mxu0  ;;  %v1860_v19 = vmax.f32 %v1836_v53, 0.0 }
 0x69f   : > { %v1831_v18 = vadd.f32 %v2600_v51, %v1830_v17  ;;  %v1858_v21 = vmax.f32 %v1828_v55, 0.0 }
 0x6a0   : > { %v1861_v20 = vmax.f32 %v1839_v14, 0.0 }
 0x6a1   : > { %v1859_v8 = vmax.f32 %v1831_v18, 0.0 }
 0x6a2   : > { %v1867_v10 = vpack.c.bf16 %v1861_v20, %v1860_v19 }
 0x6a3   : > { %v2787_v9 = vpop.f32.mrb[4].mxu0  ;;  %v1866_v11 = vpack.c.bf16 %v1859_v8, %v1858_v21 }
 0x6a4   : > { %v1852_v22 = vadd.f32 %v2787_v9, %v2600_v51  ;;  %v1843_v23 = vpop.f32.mrb[5].mxu0 }
 0x6a5   : > { %v1844_v24 = vadd.f32 %v2600_v51, %v1843_v23  ;;  %v2788_v25 = vpop.f32.mrb[6].mxu0  ;;  %2797 = vmatprep.mubr.msk.bf16.mxu1 %vm1325_vm3, %v1866_v11 }
 0x6a6   : > { %v1855_v12 = vadd.f32 %v2788_v25, %v2600_v51  ;;  %v1846_v13 = vpop.f32.mrb[7].mxu0  ;;  %2798 = vmatmul.mubr.msk.bf16.vlgmr.msra.gmra.mrb[0].mxu1 %vm1325_vm3, %v1867_v10  ;;  %v1864_v57 = vmax.f32 %v1852_v22, 0.0 }
 0x6a7   : > { %v1847_v26 = vadd.f32 %v2600_v51, %v1846_v13  ;;  %v1862_v15 = vmax.f32 %v1844_v24, 0.0 }
 0x6a8   : > { %v1865_v61 = vmax.f32 %v1855_v12, 0.0 }
 0x6a9   : > { %v1863_v60 = vmax.f32 %v1847_v26, 0.0 }
 0x6aa   : > { %v1869_v16 = vpack.c.bf16 %v1865_v61, %v1864_v57 }
 0x6ab   : > { %v1868_v62 = vpack.c.bf16 %v1863_v60, %v1862_v15 }
 0x6ad   : > { %2801 = vmatprep.mubr.msk.bf16.mxu1 %vm1325_vm3, %v1868_v62 }
 0x6ae   : > { %2802 = vmatmul.mubr.msk.bf16.gmra.mrb[4].mxu1 %vm1325_vm3, %v1869_v16 }
 0x779   : > { %v2799_v5 = vpop.f32.mrb[0].mxu1 }
 0x77a   : > { %v1965_v59 = vadd.f32 %v2799_v5, %v2607_v2  ;;  %v1956_v3 = vpop.f32.mrb[1].mxu1 }
 0x77b   : > { %v1957_v6 = vadd.f32 %v2607_v2, %v1956_v3  ;;  %v2800_v63 = vpop.f32.mrb[2].mxu1 }
 0x77c   : > { %v1968_v1 = vadd.f32 %v2800_v63, %v2607_v2  ;;  %v1959_v29 = vpop.f32.mrb[3].mxu1  ;;  %v1989_v32 = vadd.f32 %v1965_v59, %v3649_v58 }
 0x77d   : > { %v1960_v4 = vadd.f32 %v2607_v2, %v1959_v29  ;;  %v1987_v35 = vadd.f32 %v1957_v6, %v3640_v7 }
 0x77e   : > { %v2003_v33 = vsel %vm959_vm1, %v1989_v32, 0.0  ;;  %v1990_v34 = vadd.f32 %v1968_v1, %v3651_v37 }
 0x77f   : > { %2004 = vadd.xlane.f32.xlu0 %v2003_v33  ;;  %v1988_v38 = vadd.f32 %v1960_v4, %v3642_v28  ;;  %v1997_v30 = vsel %vm959_vm1, %v1987_v35, 0.0 }
 0x780   : > { %v2006_v36 = vsel %vm959_vm1, %v1990_v34, 0.0 }
 0x781   : > { %2007 = vadd.xlane.f32.xlu1 %v2006_v36  ;;  %v2803_v39 = vpop.f32.mrb[4].mxu1  ;;  %v2000_v31 = vsel %vm959_vm1, %v1988_v38, 0.0 }
 0x782   : > { %v1972_v0 = vpop.f32.mrb[5].mxu1  ;;  %v1981_v42 = vadd.f32 %v2803_v39, %v2607_v2 }
 0x783   : > { %v1973_v43 = vadd.f32 %v2607_v2, %v1972_v0  ;;  %1998 = vadd.xlane.f32.xlu0 %v1997_v30  ;;  %v2804_v58 = vpop.f32.mrb[6].mxu1 }
 0x784   : > { %v1975_v47 = vpop.f32.mrb[7].mxu1  ;;  %v1984_v37 = vadd.f32 %v2804_v58, %v2607_v2  ;;  %v1993_v49 = vadd.f32 %v1981_v42, %v3666_v48 }
 0x785   : > { %v1976_v40 = vadd.f32 %v2607_v2, %v1975_v47  ;;  %2001 = vadd.xlane.f32.xlu1 %v2000_v31  ;;  %v1991_v7 = vadd.f32 %v1973_v43, %v3658_v45 }
 0x786   : > { %v1994_v41 = vadd.f32 %v1984_v37, %v3668_v44  ;;  %v2015_v51 = vsel %vm959_vm1, %v1993_v49, 0.0 }
 0x787   : > { %v2009_v27 = vsel %vm959_vm1, %v1991_v7, 0.0  ;;  %v1992_v28 = vadd.f32 %v1976_v40, %v3660_v46 }
 0x788   : > { %2010 = vadd.xlane.f32.xlu0 %v2009_v27  ;;  %v2018_v52 = vsel %vm959_vm1, %v1994_v41, 0.0 }
 0x789   : > { %v2012_v50 = vsel %vm959_vm1, %v1992_v28, 0.0 }
 0x78a   : > { %2013 = vadd.xlane.f32.xlu1 %v2012_v50 }
 0x78c   : > { %2016 = vadd.xlane.f32.xlu0 %v2015_v51 }
 0x78e   : > { %2019 = vadd.xlane.f32.xlu1 %v2018_v52 }
 0x80c   : > { %v2005_v53 = vpop.xlane.xlu0 %2004 }
 0x80d   : > { %v2023_v45 = vmul.f32 0.03125, %v2005_v53 }
 0x80e   : > { %v2008_v54 = vpop.xlane.xlu1 %2007 }
 0x80f   : > { %v3705_v55 = vsub.f32 %v1989_v32, %v2023_v45  ;;  %v2024_v46 = vmul.f32 0.03125, %v2008_v54 }
 0x810   : > { %v1999_v56 = vpop.xlane.xlu0 %1998 }
 0x811   : > { %v3707_v48 = vsub.f32 %v1990_v34, %v2024_v46  ;;  %v2021_v14 = vmul.f32 0.03125, %v1999_v56  ;;  %v2039_v44 = vmul.f32 %v3705_v55, %v3705_v55  ;;  %v2617_v46 = vld [vmem:[%s878_s20] ss:$0 sm:$0xff] }
 0x812   : > { %v2002_v17 = vpop.xlane.xlu1 %2001 }
 0x813   : > { %v3711_v18 = vsub.f32 %v1987_v35, %v2021_v14  ;;  %v2022_v19 = vmul.f32 0.03125, %v2002_v17  ;;  %v2051_v20 = vsel %vm959_vm1, %v2039_v44, 0.0  ;;  %v2040_v21 = vmul.f32 %v3707_v48, %v3707_v48 }
 0x814   : > { %2052 = vadd.xlane.f32.xlu0 %v2051_v20 }
 0x815   : > { %v3716_v8 = vsub.f32 %v1988_v38, %v2022_v19  ;;  %v2011_v10 = vpop.xlane.xlu0 %2010  ;;  %v2054_v9 = vsel %vm959_vm1, %v2040_v21, 0.0  ;;  %v2037_v11 = vmul.f32 %v3711_v18, %v3711_v18 }
 0x816   : > { %v2025_v22 = vmul.f32 0.03125, %v2011_v10  ;;  %2055 = vadd.xlane.f32.xlu1 %v2054_v9 }
 0x817   : > { %v2014_v23 = vpop.xlane.xlu1 %2013  ;;  %v2045_v24 = vsel %vm959_vm1, %v2037_v11, 0.0  ;;  %v2038_v25 = vmul.f32 %v3716_v8, %v3716_v8 }
 0x818   : > { %v3724_v12 = vsub.f32 %v1991_v7, %v2025_v22  ;;  %v2026_v13 = vmul.f32 0.03125, %v2014_v23  ;;  %2046 = vadd.xlane.f32.xlu0 %v2045_v24 }
 0x819   : > { %v2017_v26 = vpop.xlane.xlu0 %2016  ;;  %v2048_v57 = vsel %vm959_vm1, %v2038_v25, 0.0 }
 0x81a   : > { %v3727_v61 = vsub.f32 %v1992_v28, %v2026_v13  ;;  %v2027_v15 = vmul.f32 0.03125, %v2017_v26  ;;  %2049 = vadd.xlane.f32.xlu1 %v2048_v57  ;;  %v2041_v60 = vmul.f32 %v3724_v12, %v3724_v12 }
 0x81b   : > { %v2020_v16 = vpop.xlane.xlu1 %2019 }
 0x81c   : > { %v3731_v62 = vsub.f32 %v1993_v49, %v2027_v15  ;;  %v2028_v2 = vmul.f32 0.03125, %v2020_v16  ;;  %v2057_v5 = vsel %vm959_vm1, %v2041_v60, 0.0  ;;  %v2042_v59 = vmul.f32 %v3727_v61, %v3727_v61 }
 0x81d   : > { %2058 = vadd.xlane.f32.xlu0 %v2057_v5 }
 0x81e   : > { %v3736_v3 = vsub.f32 %v1994_v41, %v2028_v2  ;;  %v2060_v6 = vsel %vm959_vm1, %v2042_v59, 0.0  ;;  %v2043_v63 = vmul.f32 %v3731_v62, %v3731_v62  ;;  %v2616_v41 = vld [vmem:[%s875_s1] ss:$0 sm:$0xff] }
 0x81f   : > { %2061 = vadd.xlane.f32.xlu1 %v2060_v6 }
 0x820   : > { %v2063_v1 = vsel %vm959_vm1, %v2043_v63, 0.0  ;;  %v2044_v29 = vmul.f32 %v3736_v3, %v3736_v3 }
 0x821   : > { %2064 = vadd.xlane.f32.xlu0 %v2063_v1 }
 0x822   : > { %v2066_v32 = vsel %vm959_vm1, %v2044_v29, 0.0 }
 0x823   : > { %2067 = vadd.xlane.f32.xlu1 %v2066_v32 }
 0x8a1   : > { %v2053_v4 = vpop.xlane.xlu0 %2052 }
 0x8a2   : > { %v2071_v33 = vmul.f32 0.03125, %v2053_v4 }
 0x8a3   : > { %v2056_v34 = vpop.xlane.xlu1 %2055 }
 0x8a4   : > { %v2079_v35 = vadd.f32 1e-05, %v2071_v33  ;;  %v2072_v36 = vmul.f32 0.03125, %v2056_v34 }
 0x8a5   : > { %v2047_v38 = vpop.xlane.xlu0 %2046 }
 0x8a6   : > { %3002 = vrsqrt.f32 %v2079_v35  ;;  %v2080_v39 = vadd.f32 1e-05, %v2072_v36  ;;  %v2069_v0 = vmul.f32 0.03125, %v2047_v38 }
 0x8a7   : > { %v2050_v30 = vpop.xlane.xlu1 %2049 }
 0x8a8   : > { %3004 = vrsqrt.f32 %v2080_v39  ;;  %v2077_v42 = vadd.f32 1e-05, %v2069_v0  ;;  %v2070_v43 = vmul.f32 0.03125, %v2050_v30 }
 0x8aa   : > { %3006 = vrsqrt.f32 %v2077_v42  ;;  %v2078_v58 = vadd.f32 1e-05, %v2070_v43  ;;  %v2059_v47 = vpop.xlane.xlu0 %2058 }
 0x8ab   : > { %v2073_v31 = vmul.f32 0.03125, %v2059_v47 }
 0x8ac   : > { %3008 = vrsqrt.f32 %v2078_v58  ;;  %v2062_v37 = vpop.xlane.xlu1 %2061 }
 0x8ad   : > { %v2081_v40 = vadd.f32 1e-05, %v2073_v31  ;;  %v2074_v7 = vmul.f32 0.03125, %v2062_v37 }
 0x8ae   : > { %v2065_v27 = vpop.xlane.xlu0 %2064 }
 0x8af   : > { %3010 = vrsqrt.f32 %v2081_v40  ;;  %v2082_v28 = vadd.f32 1e-05, %v2074_v7  ;;  %v2075_v49 = vmul.f32 0.03125, %v2065_v27 }
 0x8b0   : > { %v3003_v50 = vpop.eup %3002  ;;  %v2068_v51 = vpop.xlane.xlu1 %2067 }
 0x8b1   : > { %v2095_v52 = vmul.f32 %v3003_v50, %v3705_v55  ;;  %3012 = vrsqrt.f32 %v2082_v28  ;;  %v2083_v53 = vadd.f32 1e-05, %v2075_v49  ;;  %v2076_v45 = vmul.f32 0.03125, %v2068_v51 }
 0x8b2   : > { %v3005_v54 = vpop.eup %3004 }
 0x8b3   : > { %v2109_v56 = vmul.f32 %v2616_v41, %v2095_v52  ;;  %v2096_v14 = vmul.f32 %v3005_v54, %v3707_v48  ;;  %3014 = vrsqrt.f32 %v2083_v53  ;;  %v2084_v44 = vadd.f32 1e-05, %v2076_v45 }
 0x8b4   : > { %v3007_v17 = vpop.eup %3006 }
 0x8b5   : > { %v2123_v19 = vadd.f32 %v2617_v46, %v2109_v56  ;;  %v2110_v20 = vmul.f32 %v2616_v41, %v2096_v14  ;;  %v2093_v21 = vmul.f32 %v3007_v17, %v3711_v18  ;;  %3016 = vrsqrt.f32 %v2084_v44 }
 0x8b6   : > { %v3009_v55 = vpop.eup %3008 }
 0x8b7   : > { %v2124_v10 = vadd.f32 %v2617_v46, %v2110_v20  ;;  %v2107_v9 = vmul.f32 %v2616_v41, %v2093_v21  ;;  %v2094_v11 = vmul.f32 %v3009_v55, %v3716_v8  ;;  %2135 = vst.msk [vmem:[#allocation2 + $0x10] sm:$0xff] (!%p2618_p9), %vm959_vm1, %v2123_v19 }
 0x8b9   : > { %v3011_v22 = vpop.eup %3010  ;;  %v2121_v23 = vadd.f32 %v2617_v46, %v2107_v9  ;;  %v2108_v24 = vmul.f32 %v2616_v41, %v2094_v11  ;;  %2136 = vst.msk [vmem:[#allocation2 + $0x18] sm:$0xff] (!%p2618_p9), %vm959_vm1, %v2124_v10 }
 0x8ba   : > { %v2097_v25 = vmul.f32 %v3011_v22, %v3724_v12 }
 0x8bb   : > { %v3013_v13 = vpop.eup %3012  ;;  %v2122_v48 = vadd.f32 %v2617_v46, %v2108_v24  ;;  %2133 = vst.msk [vmem:[#allocation2] sm:$0xff] (!%p2618_p9), %vm959_vm1, %v2121_v23 }
 0x8bc   : > { %v2111_v26 = vmul.f32 %v2616_v41, %v2097_v25  ;;  %v2098_v57 = vmul.f32 %v3013_v13, %v3727_v61 }
 0x8bd   : > { %v3015_v15 = vpop.eup %3014  ;;  %2134 = vst.msk [vmem:[#allocation2 + $0x8] sm:$0xff] (!%p2618_p9), %vm959_vm1, %v2122_v48 }
 0x8be   : > { %v2125_v60 = vadd.f32 %v2617_v46, %v2111_v26  ;;  %v2112_v16 = vmul.f32 %v2616_v41, %v2098_v57  ;;  %v2099_v18 = vmul.f32 %v3015_v15, %v3731_v62  ;;  %2132 = sbr.rel (%p2618_p9) target bundleno = 2247 (0x8c7), region = 111 }
 0x8bf   : > { %v3017_v2 = vpop.eup %3016 }
 0x8c0   : > { %v2126_v5 = vadd.f32 %v2617_v46, %v2112_v16  ;;  %v2113_v59 = vmul.f32 %v2616_v41, %v2099_v18  ;;  %v2100_v8 = vmul.f32 %v3017_v2, %v3736_v3  ;;  %2137 = vst.msk [vmem:[#allocation2 + $0x20] sm:$0xff] (!%p2618_p9), %vm959_vm1, %v2125_v60 }
 0x8c2   : > { %v2127_v6 = vadd.f32 %v2617_v46, %v2113_v59  ;;  %v2114_v63 = vmul.f32 %v2616_v41, %v2100_v8  ;;  %2138 = vst.msk [vmem:[#allocation2 + $0x28] sm:$0xff] (!%p2618_p9), %vm959_vm1, %v2126_v5 }
 0x8c4   : > { %v2128_v1 = vadd.f32 %v2617_v46, %v2114_v63  ;;  %2139 = vst.msk [vmem:[#allocation2 + $0x30] sm:$0xff] (!%p2618_p9), %vm959_vm1, %v2127_v6 }
 0x8c6   : > { %2140 = vst.msk [vmem:[#allocation2 + $0x38] sm:$0xff] %vm959_vm1, %v2128_v1 }
 0x8c7 PF: > { %s3891_s20 = sld [smem:[#allocation3_spill]] }
 0x8cd   : > { %p2619_p10 = scmp.ne.s32.totalorder %s3891_s20, 1 }
 0x8ce   : > { %s3892_s0 = sld [smem:[#allocation19_spill]] (!%p2619_p10)  ;;  %v2145_v62 = vpack.c.bf16 (!%p2619_p10), %v2122_v48, %v2121_v23  ;;  %v2147_v3 = vpack.c.bf16 (!%p2619_p10), %v2126_v5, %v2125_v60  ;;  %v2146_v29 = vpack.c.bf16 (!%p2619_p10), %v2124_v10, %v2123_v19  ;;  %v2148_v32 = vpack.c.bf16 (!%p2619_p10), %v2128_v1, %v2127_v6  ;;  %s3894_s29 = sld [smem:[#allocation20_spill]] (!%p2619_p10) }
 0x8cf   : > { %2144 = sbr.rel (%p2619_p10) target bundleno = 2487 (0x9b7), region = 115 }
 0x8d0   : > { %2809 = vmatprep.mubr.msk.bf16.mxu0 (!%p2619_p10), %vm959_vm1, %v2145_v62  ;;  %2813 = vmatprep.mubr.msk.bf16.mxu1 (!%p2619_p10), %vm959_vm1, %v2147_v3 }
 0x8d4   : > { %s3893_s27 = smov (!%p2619_p10), %s3892_s0  ;;  %v3018_v12 = vld [vmem:[%s3892_s0] sm:$0xff] (!%p2619_p10)  }
 0x8d5   : > { %v3019_v61 = vld [vmem:[%s3893_s27 + $0x8] sm:$0xff] (!%p2619_p10)   ;;  %2805 = vmatprep.subr.bf16.mxu0 (!%p2619_p10), %v3018_v12  ;;  %2821 = vmatprep.subr.bf16.mxu1 (!%p2619_p10), %v3018_v12  ;;  %v2620_v4 = vld [vmem:[%s3894_s29] ss:$0 sm:$0xff] (!%p2619_p10) }
 0x8d6   : > { %2806 = vmatpush3.bf16.msra.mxu0 %v3018_v12  ;;  %2823 = vmatpush3.bf16.msra.mxu1 %v3018_v12 }
 0x8d7   : > { %2807 = vmatprep.subr.bf16.mxu0 %v3019_v61  ;;  %2822 = vmatprep.subr.bf16.mxu1 %v3019_v61 }
 0x8da   : > { %2808 = vmatpush3.bf16.msra.mxu0 %v3019_v61  ;;  %2824 = vmatpush3.bf16.msra.mxu1 %v3019_v61 }
 0x8dd   : > { %2810 = vmatmul.mubr.msk.bf16.vlgmr.msra.gmra.mrb[0].mxu0 %vm959_vm1, %v2146_v29  ;;  %2814 = vmatmul.mubr.msk.bf16.vlgmr.msra.gmra.mrb[0].mxu1 %vm959_vm1, %v2148_v32 }
 0x9b0   : > { %v2811_v33 = vpop.f32.mrb[0].mxu0  ;;  %v2815_v34 = vpop.f32.mrb[0].mxu1 }
 0x9b1   : > { %v2227_v35 = vadd.f32 %v2811_v33, %v2620_v4  ;;  %v2243_v36 = vadd.f32 %v2815_v34, %v2620_v4  ;;  %v2218_v38 = vpop.f32.mrb[1].mxu0  ;;  %v2234_v39 = vpop.f32.mrb[1].mxu1 }
 0x9b2   : > { %v2219_v0 = vadd.f32 %v2620_v4, %v2218_v38  ;;  %v2235_v30 = vadd.f32 %v2620_v4, %v2234_v39  ;;  %v2812_v42 = vpop.f32.mrb[2].mxu0  ;;  %v2816_v43 = vpop.f32.mrb[2].mxu1 }
 0x9b3   : > { %2251 = vst [vmem:[%s3351_s11 + $0x10] sm:$0xff] %v2227_v35  ;;  %2255 = vst [vmem:[%s3351_s11 + $0x30] sm:$0xff] %v2243_v36  ;;  %v2230_v58 = vadd.f32 %v2812_v42, %v2620_v4  ;;  %v2246_v47 = vadd.f32 %v2816_v43, %v2620_v4  ;;  %v2221_v31 = vpop.f32.mrb[3].mxu0  ;;  %v2237_v37 = vpop.f32.mrb[3].mxu1 }
 0x9b4   : > { %2249 = vst [vmem:[%s3351_s11] sm:$0xff] %v2219_v0  ;;  %2253 = vst [vmem:[%s3351_s11 + $0x20] sm:$0xff] %v2235_v30  ;;  %v2222_v40 = vadd.f32 %v2620_v4, %v2221_v31  ;;  %v2238_v7 = vadd.f32 %v2620_v4, %v2237_v37 }
 0x9b5   : > { %2252 = vst [vmem:[%s3351_s11 + $0x18] sm:$0xff] %v2230_v58  ;;  %2256 = vst [vmem:[%s3351_s11 + $0x38] sm:$0xff] %v2246_v47 }
 0x9b6   : > { %2250 = vst [vmem:[%s3351_s11 + $0x8] sm:$0xff] %v2222_v40  ;;  %2254 = vst [vmem:[%s3351_s11 + $0x28] sm:$0xff] %v2238_v7 }
 0x9b7 PF: > { %s3895_s25 = sld [smem:[#allocation6_spill]]  ;;  %s3896_s0 = sld [smem:[#allocation4_spill]] }
 0x9b8   : > { %s3897_s30 = sld [smem:[#allocation5_spill]]  ;;  %s3898_s20 = sld [smem:[#allocation7_spill]] }
 0x9b9   : > { %s3899_s21 = sld [smem:[#allocation8_spill]] }
 0x9bd   : > { %s29_s1 = sadd.s32 1, %s3895_s25  }
 0x9be   : > { %p26_p11 = scmp.ge.s32.totalorder %s29_s1, 6  }
 0x9c0   :  { %28 = sbr.rel (!%p26_p11) target bundleno = 11 (0xb), region = 211 }

</bundles_post_ra>
